<compile_context>
chip_gen: v7x
topology: tpu7x:2x2x1
jax: 0.10.0
libtpu: 0.0.40
codegen_flags: <defaults>
</compile_context>

<pallas_src>
import jax
import jax.numpy as jnp
from jax.experimental import pallas as pl
from jax.experimental.pallas import tpu as pltpu

_LANE = 128
_SUBLANE = 8


def _round_up(x, m):
    return ((x + m - 1) // m) * m


def _gru_fc_kernel(x_ref, wih_ref, whh_ref, bih_ref, bhh_ref, wfc_ref, bfc_ref,
                   h_out_ref, y_out_ref, gi_ref):
    """Whole-sequence GRU + fc head in one invocation.

    x_ref:   (S*Bp, I)   time-major, batch-padded, flattened over (time, batch)
    wih_ref: (I, 3*Hp)   W_ih^T, per-gate lane-padded         (gate order r, z, n)
    whh_ref: (Hp, 3*Hp)  W_hh^T, per-gate lane-padded
    bih/bhh: (1, 3*Hp)
    wfc_ref: (Hp, Op)    W_fc^T, padded; bfc_ref: (1, Op)
    gi_ref:  (S*Bp, 3*Hp) VMEM scratch holding the hoisted input projection.
    """
    Bp = h_out_ref.shape[0]
    Hp = whh_ref.shape[0]
    S = x_ref.shape[0] // Bp

    # ---- Hoisted input projection: one MXU matmul covering every timestep. ----
    gi_ref[...] = (
        jnp.dot(x_ref[...], wih_ref[...], preferred_element_type=jnp.float32)
        + bih_ref[...]
    )

    whh = whh_ref[...]
    bhh = bhh_ref[...]

    # ---- Serial recurrence: only the h-dependent matmul + gate math per step. ----
    def step(t, h_prev):
        off = pl.multiple_of(t * Bp, Bp)
        gi = gi_ref[pl.ds(off, Bp), :]                      # (Bp, 3*Hp)
        gh = jnp.dot(h_prev, whh, preferred_element_type=jnp.float32) + bhh
        r = jax.nn.sigmoid(gi[:, 0 * Hp:1 * Hp] + gh[:, 0 * Hp:1 * Hp])
        z = jax.nn.sigmoid(gi[:, 1 * Hp:2 * Hp] + gh[:, 1 * Hp:2 * Hp])
        n = jnp.tanh(gi[:, 2 * Hp:3 * Hp] + r * gh[:, 2 * Hp:3 * Hp])
        return (1.0 - z) * n + z * h_prev

    h0 = jnp.zeros((Bp, Hp), jnp.float32)                   # PyTorch default h0 = 0
    h_last = jax.lax.fori_loop(0, S, step, h0, unroll=True)

    # ---- Final hidden state + fc + sigmoid head (lane-dense padded stores). ----
    h_out_ref[...] = h_last
    logits = jnp.dot(h_last, wfc_ref[...], preferred_element_type=jnp.float32) + bfc_ref[...]
    y_out_ref[...] = jax.nn.sigmoid(logits)


def net3_forward(x_bsi, params):
    """x_bsi: (batch, seq, input_size) — the layout PyTorch's forward receives.

    Returns (output, hidden): output (1, B, output_size), hidden (1, B, hidden_size),
    matching the PyTorch module.
    """
    wih, whh, bih, bhh, wfc, bfc = params   # PyTorch shapes: (3H,I),(3H,H),(3H,),(3H,),(O,H),(O,)
    B, S, I = x_bsi.shape
    H = whh.shape[1]
    O = wfc.shape[0]

    Hp = _round_up(H, _LANE)
    Op = _round_up(O, _LANE)
    Bp = _round_up(B, _SUBLANE)

    f32 = jnp.float32

    def pad_gates_T(w):          # (3H, K) -> (K, 3*Hp): transpose + per-gate lane pad
        wr = w.astype(f32).reshape(3, H, -1)                    # (3, H, K)
        wr = jnp.transpose(wr, (2, 0, 1))                       # (K, 3, H)
        wr = jnp.pad(wr, ((0, 0), (0, 0), (0, Hp - H)))         # (K, 3, Hp)
        return wr.reshape(w.shape[1], 3 * Hp)

    def pad_bias(b):             # (3H,) -> (1, 3*Hp)
        br = b.astype(f32).reshape(3, H)
        br = jnp.pad(br, ((0, 0), (0, Hp - H)))
        return br.reshape(1, 3 * Hp)

    wih_p = pad_gates_T(wih)                                    # (I, 3*Hp)
    whh_p = jnp.pad(pad_gates_T(whh), ((0, Hp - H), (0, 0)))    # (Hp, 3*Hp)
    bih_p = pad_bias(bih)
    bhh_p = pad_bias(bhh)
    wfc_p = jnp.pad(wfc.astype(f32).T, ((0, Hp - H), (0, Op - O)))          # (Hp, Op)
    bfc_p = jnp.pad(bfc.astype(f32).reshape(1, O), ((0, 0), (0, Op - O)))   # (1, Op)

    # Time-major, batch-padded, flattened over (time, batch): (S*Bp, I).
    x_sbi = jnp.transpose(x_bsi, (1, 0, 2)).astype(f32)
    x_p = jnp.pad(x_sbi, ((0, 0), (0, Bp - B), (0, 0))).reshape(S * Bp, I)

    # NOTE: grid=(1,) => no pipelining across steps, so default buffering of the
    # resident weight blocks is irrelevant at these sizes (VMEM use is a few 100 KB).
    h_out, y_out = pl.pallas_call(
        _gru_fc_kernel,
        out_shape=(jax.ShapeDtypeStruct((Bp, Hp), f32),
                   jax.ShapeDtypeStruct((Bp, Op), f32)),
        grid_spec=pltpu.PrefetchScalarGridSpec(
            num_scalar_prefetch=0,
            grid=(1,),
            in_specs=[
                pl.BlockSpec((S * Bp, I), lambda i: (0, 0)),        # x (whole sequence)
                pl.BlockSpec((I, 3 * Hp), lambda i: (0, 0)),        # W_ih^T
                pl.BlockSpec((Hp, 3 * Hp), lambda i: (0, 0)),       # W_hh^T
                pl.BlockSpec((1, 3 * Hp), lambda i: (0, 0)),        # b_ih
                pl.BlockSpec((1, 3 * Hp), lambda i: (0, 0)),        # b_hh
                pl.BlockSpec((Hp, Op), lambda i: (0, 0)),           # W_fc^T
                pl.BlockSpec((1, Op), lambda i: (0, 0)),            # b_fc
            ],
            out_specs=[
                pl.BlockSpec((Bp, Hp), lambda i: (0, 0)),
                pl.BlockSpec((Bp, Op), lambda i: (0, 0)),
            ],
            scratch_shapes=[pltpu.VMEM((S * Bp, 3 * Hp), f32)],     # hoisted gi buffer
        ),
        compiler_params=pltpu.CompilerParams(
            dimension_semantics=("arbitrary",),
        ),
    )(x_p, wih_p, whh_p, bih_p, bhh_p, wfc_p, bfc_p)

    hidden = h_out[:B, :H][None, ...]    # (1, B, H) — num_layers dim, like PyTorch
    output = y_out[:B, :O][None, ...]    # (1, B, O)
    return output, hidden


def init_params(key, input_size, hidden_size, output_size):
    """PyTorch-style parameters: uniform(-1/sqrt(H), 1/sqrt(H)), PyTorch shapes."""
    ks = jax.random.split(key, 6)
    bound = 1.0 / jnp.sqrt(jnp.float32(hidden_size))
    u = lambda k, shape: jax.random.uniform(k, shape, jnp.float32, -bound, bound)
    wih = u(ks[0], (3 * hidden_size, input_size))    # weight_ih_l0
    whh = u(ks[1], (3 * hidden_size, hidden_size))   # weight_hh_l0
    bih = u(ks[2], (3 * hidden_size,))               # bias_ih_l0
    bhh = u(ks[3], (3 * hidden_size,))               # bias_hh_l0
    wfc = u(ks[4], (output_size, hidden_size))       # fc.weight
    bfc = u(ks[5], (output_size,))                   # fc.bias
    return wih, whh, bih, bhh, wfc, bfc


def _reference_forward(x_bsi, params):
    """Pure-JAX reference (lax.scan) with identical GRU semantics, for validation."""
    wih, whh, bih, bhh, wfc, bfc = params
    B, S, I = x_bsi.shape
    H = whh.shape[1]
    x_sbi = jnp.transpose(x_bsi, (1, 0, 2)).astype(jnp.float32)

    def step(h, x_t):
        gi = x_t @ wih.T + bih
        gh = h @ whh.T + bhh
        r = jax.nn.sigmoid(gi[:, :H] + gh[:, :H])
        z = jax.nn.sigmoid(gi[:, H:2 * H] + gh[:, H:2 * H])
        n = jnp.tanh(gi[:, 2 * H:] + r * gh[:, 2 * H:])
        h_new = (1.0 - z) * n + z * h
        return h_new, None

    h0 = jnp.zeros((B, H), jnp.float32)
    h_last, _ = jax.lax.scan(step, h0, x_sbi)
    y = jax.nn.sigmoid(h_last @ wfc.T + bfc)
    return y[None, ...], h_last[None, ...]


if __name__ == "__main__":
    # Small shapes consistent with the module: batch=4, seq=8, input=16, hidden=32, out=8.
    B, S, I, H, O = 4, 8, 16, 32, 8

    key = jax.random.PRNGKey(0)
    k_x, k_p = jax.random.split(key)
    x = jax.random.normal(k_x, (B, S, I), jnp.float32)   # PyTorch-style (batch, seq, feat)
    params = init_params(k_p, I, H, O)

    output, hidden = net3_forward(x, params)
    output, hidden = jax.block_until_ready((output, hidden))

    ref_out, ref_hid = _reference_forward(x, params)
    assert output.shape == (1, B, O) and hidden.shape == (1, B, H)
    assert jnp.allclose(output, ref_out, atol=1e-5, rtol=1e-5)
    assert jnp.allclose(hidden, ref_hid, atol=1e-5, rtol=1e-5)

    print("KERNEL_OK")
</pallas_src>

<mosaic_0001>
module attributes {stable_mosaic.version = 11 : i64} {
  func.func @_gru_fc_kernel(%arg0: i32, %arg1: memref<64x16xf32, #tpu.memory_space<vmem>>, %arg2: memref<16x384xf32, #tpu.memory_space<vmem>>, %arg3: memref<128x384xf32, #tpu.memory_space<vmem>>, %arg4: memref<1x384xf32, #tpu.memory_space<vmem>>, %arg5: memref<1x384xf32, #tpu.memory_space<vmem>>, %arg6: memref<128x128xf32, #tpu.memory_space<vmem>>, %arg7: memref<1x128xf32, #tpu.memory_space<vmem>>, %arg8: memref<8x128xf32, #tpu.memory_space<vmem>>, %arg9: memref<8x128xf32, #tpu.memory_space<vmem>>, %arg10: memref<64x384xf32, #tpu.memory_space<vmem>>) attributes {dimension_semantics = [#tpu.dimension_semantics<arbitrary>], iteration_bounds = array<i64: 1>, scalar_prefetch = 0 : i64, scratch_operands = 1 : i64, tpu.core_type = #tpu.core_type<tc>, window_params = [{pipeline_mode = #tpu.pipeline_mode<synchronous>, transform_indices = @transform_0, window_bounds = array<i64: 64, 16>}, {pipeline_mode = #tpu.pipeline_mode<synchronous>, transform_indices = @transform_1, window_bounds = array<i64: 16, 384>}, {pipeline_mode = #tpu.pipeline_mode<synchronous>, transform_indices = @transform_2, window_bounds = array<i64: 128, 384>}, {pipeline_mode = #tpu.pipeline_mode<synchronous>, transform_indices = @transform_3, window_bounds = array<i64: 1, 384>}, {pipeline_mode = #tpu.pipeline_mode<synchronous>, transform_indices = @transform_4, window_bounds = array<i64: 1, 384>}, {pipeline_mode = #tpu.pipeline_mode<synchronous>, transform_indices = @transform_5, window_bounds = array<i64: 128, 128>}, {pipeline_mode = #tpu.pipeline_mode<synchronous>, transform_indices = @transform_6, window_bounds = array<i64: 1, 128>}, {pipeline_mode = #tpu.pipeline_mode<synchronous>, transform_indices = @transform_7, window_bounds = array<i64: 8, 128>}, {pipeline_mode = #tpu.pipeline_mode<synchronous>, transform_indices = @transform_8, window_bounds = array<i64: 8, 128>}]} {
    %c0 = arith.constant 0 : index
    %c0_0 = arith.constant 0 : index
    %0 = vector.load %arg1[%c0, %c0_0] : memref<64x16xf32, #tpu.memory_space<vmem>>, vector<64x16xf32>
    %c0_1 = arith.constant 0 : index
    %c0_2 = arith.constant 0 : index
    %1 = vector.load %arg2[%c0_1, %c0_2] : memref<16x384xf32, #tpu.memory_space<vmem>>, vector<16x384xf32>
    %cst = arith.constant dense<0.000000e+00> : vector<64x384xf32>
    %2 = tpu.matmul %0, %1, %cst {dimension_numbers = #tpu.dot_dimension_numbers<[1], [0], [0], [1], [0, 0, 1, 1], [], []>} : vector<64x16xf32>, vector<16x384xf32>, vector<64x384xf32> -> vector<64x384xf32>
    %c0_3 = arith.constant 0 : index
    %c0_4 = arith.constant 0 : index
    %3 = vector.load %arg4[%c0_3, %c0_4] : memref<1x384xf32, #tpu.memory_space<vmem>>, vector<1x384xf32>
    %4 = vector.broadcast %3 : vector<1x384xf32> to vector<64x384xf32>
    %5 = arith.addf %2, %4 : vector<64x384xf32>
    %c0_5 = arith.constant 0 : index
    %c0_6 = arith.constant 0 : index
    %6 = vector.load %arg10[%c0_5, %c0_6] : memref<64x384xf32, #tpu.memory_space<vmem>>, vector<64x384xf32>
    tpu.vector_store %arg10[%c0_5, %c0_6], %5 {strides = array<i32>} : memref<64x384xf32, #tpu.memory_space<vmem>>, vector<64x384xf32>,
    %c0_7 = arith.constant 0 : index
    %c0_8 = arith.constant 0 : index
    %7 = vector.load %arg3[%c0_7, %c0_8] : memref<128x384xf32, #tpu.memory_space<vmem>>, vector<128x384xf32>
    %c0_9 = arith.constant 0 : index
    %c0_10 = arith.constant 0 : index
    %8 = vector.load %arg5[%c0_9, %c0_10] : memref<1x384xf32, #tpu.memory_space<vmem>>, vector<1x384xf32>
    %cst_11 = arith.constant 0.000000e+00 : f32
    %9 = vector.broadcast %cst_11 : f32 to vector<8x128xf32>
    %c0_i32 = arith.constant 0 : i32
    %c8_i32 = arith.constant 8 : i32
    %10 = arith.muli %c0_i32, %c8_i32 : i32
    %11 = tpu.assume_multiple %10, 8 : i32
    %12 = arith.index_cast %11 : i32 to index
    %c0_12 = arith.constant 0 : index
    %13 = vector.load %arg10[%12, %c0_12] : memref<64x384xf32, #tpu.memory_space<vmem>>, vector<8x384xf32>
    %cst_13 = arith.constant dense<0.000000e+00> : vector<8x384xf32>
    %14 = tpu.matmul %9, %7, %cst_13 {dimension_numbers = #tpu.dot_dimension_numbers<[1], [0], [0], [1], [0, 0, 1, 1], [], []>} : vector<8x128xf32>, vector<128x384xf32>, vector<8x384xf32> -> vector<8x384xf32>
    %15 = vector.broadcast %8 : vector<1x384xf32> to vector<8x384xf32>
    %16 = arith.addf %14, %15 : vector<8x384xf32>
    %17 = vector.extract_strided_slice %13 {offsets = [0, 0], sizes = [8, 128], strides = [1, 1]} : vector<8x384xf32> to vector<8x128xf32>
    %18 = vector.extract_strided_slice %16 {offsets = [0, 0], sizes = [8, 128], strides = [1, 1]} : vector<8x384xf32> to vector<8x128xf32>
    %19 = arith.addf %17, %18 : vector<8x128xf32>
    %20 = arith.negf %19 : vector<8x128xf32>
    %21 = math.exp %20 : vector<8x128xf32>
    %cst_14 = arith.constant 1.000000e+00 : f32
    %22 = vector.broadcast %cst_14 : f32 to vector<8x128xf32>
    %23 = arith.addf %22, %21 : vector<8x128xf32>
    %24 = arith.divf %22, %23 : vector<8x128xf32>
    %25 = vector.extract_strided_slice %13 {offsets = [0, 128], sizes = [8, 128], strides = [1, 1]} : vector<8x384xf32> to vector<8x128xf32>
    %26 = vector.extract_strided_slice %16 {offsets = [0, 128], sizes = [8, 128], strides = [1, 1]} : vector<8x384xf32> to vector<8x128xf32>
    %27 = arith.addf %25, %26 : vector<8x128xf32>
    %28 = arith.negf %27 : vector<8x128xf32>
    %29 = math.exp %28 : vector<8x128xf32>
    %cst_15 = arith.constant 1.000000e+00 : f32
    %30 = vector.broadcast %cst_15 : f32 to vector<8x128xf32>
    %31 = arith.addf %30, %29 : vector<8x128xf32>
    %32 = arith.divf %30, %31 : vector<8x128xf32>
    %33 = vector.extract_strided_slice %13 {offsets = [0, 256], sizes = [8, 128], strides = [1, 1]} : vector<8x384xf32> to vector<8x128xf32>
    %34 = vector.extract_strided_slice %16 {offsets = [0, 256], sizes = [8, 128], strides = [1, 1]} : vector<8x384xf32> to vector<8x128xf32>
    %35 = arith.mulf %24, %34 : vector<8x128xf32>
    %36 = arith.addf %33, %35 : vector<8x128xf32>
    %37 = math.tanh %36 : vector<8x128xf32>
    %cst_16 = arith.constant 1.000000e+00 : f32
    %38 = vector.broadcast %cst_16 : f32 to vector<8x128xf32>
    %39 = arith.subf %38, %32 : vector<8x128xf32>
    %40 = arith.mulf %39, %37 : vector<8x128xf32>
    %41 = arith.mulf %32, %9 : vector<8x128xf32>
    %42 = arith.addf %40, %41 : vector<8x128xf32>
    %c1_i32 = arith.constant 1 : i32
    %c8_i32_17 = arith.constant 8 : i32
    %43 = arith.muli %c1_i32, %c8_i32_17 : i32
    %44 = tpu.assume_multiple %43, 8 : i32
    %45 = arith.index_cast %44 : i32 to index
    %c0_18 = arith.constant 0 : index
    %46 = vector.load %arg10[%45, %c0_18] : memref<64x384xf32, #tpu.memory_space<vmem>>, vector<8x384xf32>
    %cst_19 = arith.constant dense<0.000000e+00> : vector<8x384xf32>
    %47 = tpu.matmul %42, %7, %cst_19 {dimension_numbers = #tpu.dot_dimension_numbers<[1], [0], [0], [1], [0, 0, 1, 1], [], []>} : vector<8x128xf32>, vector<128x384xf32>, vector<8x384xf32> -> vector<8x384xf32>
    %48 = vector.broadcast %8 : vector<1x384xf32> to vector<8x384xf32>
    %49 = arith.addf %47, %48 : vector<8x384xf32>
    %50 = vector.extract_strided_slice %46 {offsets = [0, 0], sizes = [8, 128], strides = [1, 1]} : vector<8x384xf32> to vector<8x128xf32>
    %51 = vector.extract_strided_slice %49 {offsets = [0, 0], sizes = [8, 128], strides = [1, 1]} : vector<8x384xf32> to vector<8x128xf32>
    %52 = arith.addf %50, %51 : vector<8x128xf32>
    %53 = arith.negf %52 : vector<8x128xf32>
    %54 = math.exp %53 : vector<8x128xf32>
    %cst_20 = arith.constant 1.000000e+00 : f32
    %55 = vector.broadcast %cst_20 : f32 to vector<8x128xf32>
    %56 = arith.addf %55, %54 : vector<8x128xf32>
    %57 = arith.divf %55, %56 : vector<8x128xf32>
    %58 = vector.extract_strided_slice %46 {offsets = [0, 128], sizes = [8, 128], strides = [1, 1]} : vector<8x384xf32> to vector<8x128xf32>
    %59 = vector.extract_strided_slice %49 {offsets = [0, 128], sizes = [8, 128], strides = [1, 1]} : vector<8x384xf32> to vector<8x128xf32>
    %60 = arith.addf %58, %59 : vector<8x128xf32>
    %61 = arith.negf %60 : vector<8x128xf32>
    %62 = math.exp %61 : vector<8x128xf32>
    %cst_21 = arith.constant 1.000000e+00 : f32
    %63 = vector.broadcast %cst_21 : f32 to vector<8x128xf32>
    %64 = arith.addf %63, %62 : vector<8x128xf32>
    %65 = arith.divf %63, %64 : vector<8x128xf32>
    %66 = vector.extract_strided_slice %46 {offsets = [0, 256], sizes = [8, 128], strides = [1, 1]} : vector<8x384xf32> to vector<8x128xf32>
    %67 = vector.extract_strided_slice %49 {offsets = [0, 256], sizes = [8, 128], strides = [1, 1]} : vector<8x384xf32> to vector<8x128xf32>
    %68 = arith.mulf %57, %67 : vector<8x128xf32>
    %69 = arith.addf %66, %68 : vector<8x128xf32>
    %70 = math.tanh %69 : vector<8x128xf32>
    %cst_22 = arith.constant 1.000000e+00 : f32
    %71 = vector.broadcast %cst_22 : f32 to vector<8x128xf32>
    %72 = arith.subf %71, %65 : vector<8x128xf32>
    %73 = arith.mulf %72, %70 : vector<8x128xf32>
    %74 = arith.mulf %65, %42 : vector<8x128xf32>
    %75 = arith.addf %73, %74 : vector<8x128xf32>
    %c2_i32 = arith.constant 2 : i32
    %c8_i32_23 = arith.constant 8 : i32
    %76 = arith.muli %c2_i32, %c8_i32_23 : i32
    %77 = tpu.assume_multiple %76, 8 : i32
    %78 = arith.index_cast %77 : i32 to index
    %c0_24 = arith.constant 0 : index
    %79 = vector.load %arg10[%78, %c0_24] : memref<64x384xf32, #tpu.memory_space<vmem>>, vector<8x384xf32>
    %cst_25 = arith.constant dense<0.000000e+00> : vector<8x384xf32>
    %80 = tpu.matmul %75, %7, %cst_25 {dimension_numbers = #tpu.dot_dimension_numbers<[1], [0], [0], [1], [0, 0, 1, 1], [], []>} : vector<8x128xf32>, vector<128x384xf32>, vector<8x384xf32> -> vector<8x384xf32>
    %81 = vector.broadcast %8 : vector<1x384xf32> to vector<8x384xf32>
    %82 = arith.addf %80, %81 : vector<8x384xf32>
    %83 = vector.extract_strided_slice %79 {offsets = [0, 0], sizes = [8, 128], strides = [1, 1]} : vector<8x384xf32> to vector<8x128xf32>
    %84 = vector.extract_strided_slice %82 {offsets = [0, 0], sizes = [8, 128], strides = [1, 1]} : vector<8x384xf32> to vector<8x128xf32>
    %85 = arith.addf %83, %84 : vector<8x128xf32>
    %86 = arith.negf %85 : vector<8x128xf32>
    %87 = math.exp %86 : vector<8x128xf32>
    %cst_26 = arith.constant 1.000000e+00 : f32
    %88 = vector.broadcast %cst_26 : f32 to vector<8x128xf32>
    %89 = arith.addf %88, %87 : vector<8x128xf32>
    %90 = arith.divf %88, %89 : vector<8x128xf32>
    %91 = vector.extract_strided_slice %79 {offsets = [0, 128], sizes = [8, 128], strides = [1, 1]} : vector<8x384xf32> to vector<8x128xf32>
    %92 = vector.extract_strided_slice %82 {offsets = [0, 128], sizes = [8, 128], strides = [1, 1]} : vector<8x384xf32> to vector<8x128xf32>
    %93 = arith.addf %91, %92 : vector<8x128xf32>
    %94 = arith.negf %93 : vector<8x128xf32>
    %95 = math.exp %94 : vector<8x128xf32>
    %cst_27 = arith.constant 1.000000e+00 : f32
    %96 = vector.broadcast %cst_27 : f32 to vector<8x128xf32>
    %97 = arith.addf %96, %95 : vector<8x128xf32>
    %98 = arith.divf %96, %97 : vector<8x128xf32>
    %99 = vector.extract_strided_slice %79 {offsets = [0, 256], sizes = [8, 128], strides = [1, 1]} : vector<8x384xf32> to vector<8x128xf32>
    %100 = vector.extract_strided_slice %82 {offsets = [0, 256], sizes = [8, 128], strides = [1, 1]} : vector<8x384xf32> to vector<8x128xf32>
    %101 = arith.mulf %90, %100 : vector<8x128xf32>
    %102 = arith.addf %99, %101 : vector<8x128xf32>
    %103 = math.tanh %102 : vector<8x128xf32>
    %cst_28 = arith.constant 1.000000e+00 : f32
    %104 = vector.broadcast %cst_28 : f32 to vector<8x128xf32>
    %105 = arith.subf %104, %98 : vector<8x128xf32>
    %106 = arith.mulf %105, %103 : vector<8x128xf32>
    %107 = arith.mulf %98, %75 : vector<8x128xf32>
    %108 = arith.addf %106, %107 : vector<8x128xf32>
    %c3_i32 = arith.constant 3 : i32
    %c8_i32_29 = arith.constant 8 : i32
    %109 = arith.muli %c3_i32, %c8_i32_29 : i32
    %110 = tpu.assume_multiple %109, 8 : i32
    %111 = arith.index_cast %110 : i32 to index
    %c0_30 = arith.constant 0 : index
    %112 = vector.load %arg10[%111, %c0_30] : memref<64x384xf32, #tpu.memory_space<vmem>>, vector<8x384xf32>
    %cst_31 = arith.constant dense<0.000000e+00> : vector<8x384xf32>
    %113 = tpu.matmul %108, %7, %cst_31 {dimension_numbers = #tpu.dot_dimension_numbers<[1], [0], [0], [1], [0, 0, 1, 1], [], []>} : vector<8x128xf32>, vector<128x384xf32>, vector<8x384xf32> -> vector<8x384xf32>
    %114 = vector.broadcast %8 : vector<1x384xf32> to vector<8x384xf32>
    %115 = arith.addf %113, %114 : vector<8x384xf32>
    %116 = vector.extract_strided_slice %112 {offsets = [0, 0], sizes = [8, 128], strides = [1, 1]} : vector<8x384xf32> to vector<8x128xf32>
    %117 = vector.extract_strided_slice %115 {offsets = [0, 0], sizes = [8, 128], strides = [1, 1]} : vector<8x384xf32> to vector<8x128xf32>
    %118 = arith.addf %116, %117 : vector<8x128xf32>
    %119 = arith.negf %118 : vector<8x128xf32>
    %120 = math.exp %119 : vector<8x128xf32>
    %cst_32 = arith.constant 1.000000e+00 : f32
    %121 = vector.broadcast %cst_32 : f32 to vector<8x128xf32>
    %122 = arith.addf %121, %120 : vector<8x128xf32>
    %123 = arith.divf %121, %122 : vector<8x128xf32>
    %124 = vector.extract_strided_slice %112 {offsets = [0, 128], sizes = [8, 128], strides = [1, 1]} : vector<8x384xf32> to vector<8x128xf32>
    %125 = vector.extract_strided_slice %115 {offsets = [0, 128], sizes = [8, 128], strides = [1, 1]} : vector<8x384xf32> to vector<8x128xf32>
    %126 = arith.addf %124, %125 : vector<8x128xf32>
    %127 = arith.negf %126 : vector<8x128xf32>
    %128 = math.exp %127 : vector<8x128xf32>
    %cst_33 = arith.constant 1.000000e+00 : f32
    %129 = vector.broadcast %cst_33 : f32 to vector<8x128xf32>
    %130 = arith.addf %129, %128 : vector<8x128xf32>
    %131 = arith.divf %129, %130 : vector<8x128xf32>
    %132 = vector.extract_strided_slice %112 {offsets = [0, 256], sizes = [8, 128], strides = [1, 1]} : vector<8x384xf32> to vector<8x128xf32>
    %133 = vector.extract_strided_slice %115 {offsets = [0, 256], sizes = [8, 128], strides = [1, 1]} : vector<8x384xf32> to vector<8x128xf32>
    %134 = arith.mulf %123, %133 : vector<8x128xf32>
    %135 = arith.addf %132, %134 : vector<8x128xf32>
    %136 = math.tanh %135 : vector<8x128xf32>
    %cst_34 = arith.constant 1.000000e+00 : f32
    %137 = vector.broadcast %cst_34 : f32 to vector<8x128xf32>
    %138 = arith.subf %137, %131 : vector<8x128xf32>
    %139 = arith.mulf %138, %136 : vector<8x128xf32>
    %140 = arith.mulf %131, %108 : vector<8x128xf32>
    %141 = arith.addf %139, %140 : vector<8x128xf32>
    %c4_i32 = arith.constant 4 : i32
    %c8_i32_35 = arith.constant 8 : i32
    %142 = arith.muli %c4_i32, %c8_i32_35 : i32
    %143 = tpu.assume_multiple %142, 8 : i32
    %144 = arith.index_cast %143 : i32 to index
    %c0_36 = arith.constant 0 : index
    %145 = vector.load %arg10[%144, %c0_36] : memref<64x384xf32, #tpu.memory_space<vmem>>, vector<8x384xf32>
    %cst_37 = arith.constant dense<0.000000e+00> : vector<8x384xf32>
    %146 = tpu.matmul %141, %7, %cst_37 {dimension_numbers = #tpu.dot_dimension_numbers<[1], [0], [0], [1], [0, 0, 1, 1], [], []>} : vector<8x128xf32>, vector<128x384xf32>, vector<8x384xf32> -> vector<8x384xf32>
    %147 = vector.broadcast %8 : vector<1x384xf32> to vector<8x384xf32>
    %148 = arith.addf %146, %147 : vector<8x384xf32>
    %149 = vector.extract_strided_slice %145 {offsets = [0, 0], sizes = [8, 128], strides = [1, 1]} : vector<8x384xf32> to vector<8x128xf32>
    %150 = vector.extract_strided_slice %148 {offsets = [0, 0], sizes = [8, 128], strides = [1, 1]} : vector<8x384xf32> to vector<8x128xf32>
    %151 = arith.addf %149, %150 : vector<8x128xf32>
    %152 = arith.negf %151 : vector<8x128xf32>
    %153 = math.exp %152 : vector<8x128xf32>
    %cst_38 = arith.constant 1.000000e+00 : f32
    %154 = vector.broadcast %cst_38 : f32 to vector<8x128xf32>
    %155 = arith.addf %154, %153 : vector<8x128xf32>
    %156 = arith.divf %154, %155 : vector<8x128xf32>
    %157 = vector.extract_strided_slice %145 {offsets = [0, 128], sizes = [8, 128], strides = [1, 1]} : vector<8x384xf32> to vector<8x128xf32>
    %158 = vector.extract_strided_slice %148 {offsets = [0, 128], sizes = [8, 128], strides = [1, 1]} : vector<8x384xf32> to vector<8x128xf32>
    %159 = arith.addf %157, %158 : vector<8x128xf32>
    %160 = arith.negf %159 : vector<8x128xf32>
    %161 = math.exp %160 : vector<8x128xf32>
    %cst_39 = arith.constant 1.000000e+00 : f32
    %162 = vector.broadcast %cst_39 : f32 to vector<8x128xf32>
    %163 = arith.addf %162, %161 : vector<8x128xf32>
    %164 = arith.divf %162, %163 : vector<8x128xf32>
    %165 = vector.extract_strided_slice %145 {offsets = [0, 256], sizes = [8, 128], strides = [1, 1]} : vector<8x384xf32> to vector<8x128xf32>
    %166 = vector.extract_strided_slice %148 {offsets = [0, 256], sizes = [8, 128], strides = [1, 1]} : vector<8x384xf32> to vector<8x128xf32>
    %167 = arith.mulf %156, %166 : vector<8x128xf32>
    %168 = arith.addf %165, %167 : vector<8x128xf32>
    %169 = math.tanh %168 : vector<8x128xf32>
    %cst_40 = arith.constant 1.000000e+00 : f32
    %170 = vector.broadcast %cst_40 : f32 to vector<8x128xf32>
    %171 = arith.subf %170, %164 : vector<8x128xf32>
    %172 = arith.mulf %171, %169 : vector<8x128xf32>
    %173 = arith.mulf %164, %141 : vector<8x128xf32>
    %174 = arith.addf %172, %173 : vector<8x128xf32>
    %c5_i32 = arith.constant 5 : i32
    %c8_i32_41 = arith.constant 8 : i32
    %175 = arith.muli %c5_i32, %c8_i32_41 : i32
    %176 = tpu.assume_multiple %175, 8 : i32
    %177 = arith.index_cast %176 : i32 to index
    %c0_42 = arith.constant 0 : index
    %178 = vector.load %arg10[%177, %c0_42] : memref<64x384xf32, #tpu.memory_space<vmem>>, vector<8x384xf32>
    %cst_43 = arith.constant dense<0.000000e+00> : vector<8x384xf32>
    %179 = tpu.matmul %174, %7, %cst_43 {dimension_numbers = #tpu.dot_dimension_numbers<[1], [0], [0], [1], [0, 0, 1, 1], [], []>} : vector<8x128xf32>, vector<128x384xf32>, vector<8x384xf32> -> vector<8x384xf32>
    %180 = vector.broadcast %8 : vector<1x384xf32> to vector<8x384xf32>
    %181 = arith.addf %179, %180 : vector<8x384xf32>
    %182 = vector.extract_strided_slice %178 {offsets = [0, 0], sizes = [8, 128], strides = [1, 1]} : vector<8x384xf32> to vector<8x128xf32>
    %183 = vector.extract_strided_slice %181 {offsets = [0, 0], sizes = [8, 128], strides = [1, 1]} : vector<8x384xf32> to vector<8x128xf32>
    %184 = arith.addf %182, %183 : vector<8x128xf32>
    %185 = arith.negf %184 : vector<8x128xf32>
    %186 = math.exp %185 : vector<8x128xf32>
    %cst_44 = arith.constant 1.000000e+00 : f32
    %187 = vector.broadcast %cst_44 : f32 to vector<8x128xf32>
    %188 = arith.addf %187, %186 : vector<8x128xf32>
    %189 = arith.divf %187, %188 : vector<8x128xf32>
    %190 = vector.extract_strided_slice %178 {offsets = [0, 128], sizes = [8, 128], strides = [1, 1]} : vector<8x384xf32> to vector<8x128xf32>
    %191 = vector.extract_strided_slice %181 {offsets = [0, 128], sizes = [8, 128], strides = [1, 1]} : vector<8x384xf32> to vector<8x128xf32>
    %192 = arith.addf %190, %191 : vector<8x128xf32>
    %193 = arith.negf %192 : vector<8x128xf32>
    %194 = math.exp %193 : vector<8x128xf32>
    %cst_45 = arith.constant 1.000000e+00 : f32
    %195 = vector.broadcast %cst_45 : f32 to vector<8x128xf32>
    %196 = arith.addf %195, %194 : vector<8x128xf32>
    %197 = arith.divf %195, %196 : vector<8x128xf32>
    %198 = vector.extract_strided_slice %178 {offsets = [0, 256], sizes = [8, 128], strides = [1, 1]} : vector<8x384xf32> to vector<8x128xf32>
    %199 = vector.extract_strided_slice %181 {offsets = [0, 256], sizes = [8, 128], strides = [1, 1]} : vector<8x384xf32> to vector<8x128xf32>
    %200 = arith.mulf %189, %199 : vector<8x128xf32>
    %201 = arith.addf %198, %200 : vector<8x128xf32>
    %202 = math.tanh %201 : vector<8x128xf32>
    %cst_46 = arith.constant 1.000000e+00 : f32
    %203 = vector.broadcast %cst_46 : f32 to vector<8x128xf32>
    %204 = arith.subf %203, %197 : vector<8x128xf32>
    %205 = arith.mulf %204, %202 : vector<8x128xf32>
    %206 = arith.mulf %197, %174 : vector<8x128xf32>
    %207 = arith.addf %205, %206 : vector<8x128xf32>
    %c6_i32 = arith.constant 6 : i32
    %c8_i32_47 = arith.constant 8 : i32
    %208 = arith.muli %c6_i32, %c8_i32_47 : i32
    %209 = tpu.assume_multiple %208, 8 : i32
    %210 = arith.index_cast %209 : i32 to index
    %c0_48 = arith.constant 0 : index
    %211 = vector.load %arg10[%210, %c0_48] : memref<64x384xf32, #tpu.memory_space<vmem>>, vector<8x384xf32>
    %cst_49 = arith.constant dense<0.000000e+00> : vector<8x384xf32>
    %212 = tpu.matmul %207, %7, %cst_49 {dimension_numbers = #tpu.dot_dimension_numbers<[1], [0], [0], [1], [0, 0, 1, 1], [], []>} : vector<8x128xf32>, vector<128x384xf32>, vector<8x384xf32> -> vector<8x384xf32>
    %213 = vector.broadcast %8 : vector<1x384xf32> to vector<8x384xf32>
    %214 = arith.addf %212, %213 : vector<8x384xf32>
    %215 = vector.extract_strided_slice %211 {offsets = [0, 0], sizes = [8, 128], strides = [1, 1]} : vector<8x384xf32> to vector<8x128xf32>
    %216 = vector.extract_strided_slice %214 {offsets = [0, 0], sizes = [8, 128], strides = [1, 1]} : vector<8x384xf32> to vector<8x128xf32>
    %217 = arith.addf %215, %216 : vector<8x128xf32>
    %218 = arith.negf %217 : vector<8x128xf32>
    %219 = math.exp %218 : vector<8x128xf32>
    %cst_50 = arith.constant 1.000000e+00 : f32
    %220 = vector.broadcast %cst_50 : f32 to vector<8x128xf32>
    %221 = arith.addf %220, %219 : vector<8x128xf32>
    %222 = arith.divf %220, %221 : vector<8x128xf32>
    %223 = vector.extract_strided_slice %211 {offsets = [0, 128], sizes = [8, 128], strides = [1, 1]} : vector<8x384xf32> to vector<8x128xf32>
    %224 = vector.extract_strided_slice %214 {offsets = [0, 128], sizes = [8, 128], strides = [1, 1]} : vector<8x384xf32> to vector<8x128xf32>
    %225 = arith.addf %223, %224 : vector<8x128xf32>
    %226 = arith.negf %225 : vector<8x128xf32>
    %227 = math.exp %226 : vector<8x128xf32>
    %cst_51 = arith.constant 1.000000e+00 : f32
    %228 = vector.broadcast %cst_51 : f32 to vector<8x128xf32>
    %229 = arith.addf %228, %227 : vector<8x128xf32>
    %230 = arith.divf %228, %229 : vector<8x128xf32>
    %231 = vector.extract_strided_slice %211 {offsets = [0, 256], sizes = [8, 128], strides = [1, 1]} : vector<8x384xf32> to vector<8x128xf32>
    %232 = vector.extract_strided_slice %214 {offsets = [0, 256], sizes = [8, 128], strides = [1, 1]} : vector<8x384xf32> to vector<8x128xf32>
    %233 = arith.mulf %222, %232 : vector<8x128xf32>
    %234 = arith.addf %231, %233 : vector<8x128xf32>
    %235 = math.tanh %234 : vector<8x128xf32>
    %cst_52 = arith.constant 1.000000e+00 : f32
    %236 = vector.broadcast %cst_52 : f32 to vector<8x128xf32>
    %237 = arith.subf %236, %230 : vector<8x128xf32>
    %238 = arith.mulf %237, %235 : vector<8x128xf32>
    %239 = arith.mulf %230, %207 : vector<8x128xf32>
    %240 = arith.addf %238, %239 : vector<8x128xf32>
    %c7_i32 = arith.constant 7 : i32
    %c8_i32_53 = arith.constant 8 : i32
    %241 = arith.muli %c7_i32, %c8_i32_53 : i32
    %242 = tpu.assume_multiple %241, 8 : i32
    %243 = arith.index_cast %242 : i32 to index
    %c0_54 = arith.constant 0 : index
    %244 = vector.load %arg10[%243, %c0_54] : memref<64x384xf32, #tpu.memory_space<vmem>>, vector<8x384xf32>
    %cst_55 = arith.constant dense<0.000000e+00> : vector<8x384xf32>
    %245 = tpu.matmul %240, %7, %cst_55 {dimension_numbers = #tpu.dot_dimension_numbers<[1], [0], [0], [1], [0, 0, 1, 1], [], []>} : vector<8x128xf32>, vector<128x384xf32>, vector<8x384xf32> -> vector<8x384xf32>
    %246 = vector.broadcast %8 : vector<1x384xf32> to vector<8x384xf32>
    %247 = arith.addf %245, %246 : vector<8x384xf32>
    %248 = vector.extract_strided_slice %244 {offsets = [0, 0], sizes = [8, 128], strides = [1, 1]} : vector<8x384xf32> to vector<8x128xf32>
    %249 = vector.extract_strided_slice %247 {offsets = [0, 0], sizes = [8, 128], strides = [1, 1]} : vector<8x384xf32> to vector<8x128xf32>
    %250 = arith.addf %248, %249 : vector<8x128xf32>
    %251 = arith.negf %250 : vector<8x128xf32>
    %252 = math.exp %251 : vector<8x128xf32>
    %cst_56 = arith.constant 1.000000e+00 : f32
    %253 = vector.broadcast %cst_56 : f32 to vector<8x128xf32>
    %254 = arith.addf %253, %252 : vector<8x128xf32>
    %255 = arith.divf %253, %254 : vector<8x128xf32>
    %256 = vector.extract_strided_slice %244 {offsets = [0, 128], sizes = [8, 128], strides = [1, 1]} : vector<8x384xf32> to vector<8x128xf32>
    %257 = vector.extract_strided_slice %247 {offsets = [0, 128], sizes = [8, 128], strides = [1, 1]} : vector<8x384xf32> to vector<8x128xf32>
    %258 = arith.addf %256, %257 : vector<8x128xf32>
    %259 = arith.negf %258 : vector<8x128xf32>
    %260 = math.exp %259 : vector<8x128xf32>
    %cst_57 = arith.constant 1.000000e+00 : f32
    %261 = vector.broadcast %cst_57 : f32 to vector<8x128xf32>
    %262 = arith.addf %261, %260 : vector<8x128xf32>
    %263 = arith.divf %261, %262 : vector<8x128xf32>
    %264 = vector.extract_strided_slice %244 {offsets = [0, 256], sizes = [8, 128], strides = [1, 1]} : vector<8x384xf32> to vector<8x128xf32>
    %265 = vector.extract_strided_slice %247 {offsets = [0, 256], sizes = [8, 128], strides = [1, 1]} : vector<8x384xf32> to vector<8x128xf32>
    %266 = arith.mulf %255, %265 : vector<8x128xf32>
    %267 = arith.addf %264, %266 : vector<8x128xf32>
    %268 = math.tanh %267 : vector<8x128xf32>
    %cst_58 = arith.constant 1.000000e+00 : f32
    %269 = vector.broadcast %cst_58 : f32 to vector<8x128xf32>
    %270 = arith.subf %269, %263 : vector<8x128xf32>
    %271 = arith.mulf %270, %268 : vector<8x128xf32>
    %272 = arith.mulf %263, %240 : vector<8x128xf32>
    %273 = arith.addf %271, %272 : vector<8x128xf32>
    %c8_i32_59 = arith.constant 8 : i32
    %c0_60 = arith.constant 0 : index
    %c0_61 = arith.constant 0 : index
    %274 = vector.load %arg8[%c0_60, %c0_61] : memref<8x128xf32, #tpu.memory_space<vmem>>, vector<8x128xf32>
    tpu.vector_store %arg8[%c0_60, %c0_61], %273 {strides = array<i32>} : memref<8x128xf32, #tpu.memory_space<vmem>>, vector<8x128xf32>,
    %c0_62 = arith.constant 0 : index
    %c0_63 = arith.constant 0 : index
    %275 = vector.load %arg6[%c0_62, %c0_63] : memref<128x128xf32, #tpu.memory_space<vmem>>, vector<128x128xf32>
    %cst_64 = arith.constant dense<0.000000e+00> : vector<8x128xf32>
    %276 = tpu.matmul %273, %275, %cst_64 {dimension_numbers = #tpu.dot_dimension_numbers<[1], [0], [0], [1], [0, 0, 1, 1], [], []>} : vector<8x128xf32>, vector<128x128xf32>, vector<8x128xf32> -> vector<8x128xf32>
    %c0_65 = arith.constant 0 : index
    %c0_66 = arith.constant 0 : index
    %277 = vector.load %arg7[%c0_65, %c0_66] : memref<1x128xf32, #tpu.memory_space<vmem>>, vector<1x128xf32>
    %278 = vector.broadcast %277 : vector<1x128xf32> to vector<8x128xf32>
    %279 = arith.addf %276, %278 : vector<8x128xf32>
    %280 = arith.negf %279 : vector<8x128xf32>
    %281 = math.exp %280 : vector<8x128xf32>
    %cst_67 = arith.constant 1.000000e+00 : f32
    %282 = vector.broadcast %cst_67 : f32 to vector<8x128xf32>
    %283 = arith.addf %282, %281 : vector<8x128xf32>
    %284 = arith.divf %282, %283 : vector<8x128xf32>
    %c0_68 = arith.constant 0 : index
    %c0_69 = arith.constant 0 : index
    %285 = vector.load %arg9[%c0_68, %c0_69] : memref<8x128xf32, #tpu.memory_space<vmem>>, vector<8x128xf32>
    tpu.vector_store %arg9[%c0_68, %c0_69], %284 {strides = array<i32>} : memref<8x128xf32, #tpu.memory_space<vmem>>, vector<8x128xf32>,
    return
  }
  func.func @transform_0(%arg0: i32) -> (i32, i32) {
    %c0_i32 = arith.constant 0 : i32
    %c0_i32_0 = arith.constant 0 : i32
    %c0_i32_1 = arith.constant 0 : i32
    return %c0_i32, %c0_i32_0 : i32, i32
  }
  func.func @transform_1(%arg0: i32) -> (i32, i32) {
    %c0_i32 = arith.constant 0 : i32
    %c0_i32_0 = arith.constant 0 : i32
    %c0_i32_1 = arith.constant 0 : i32
    return %c0_i32, %c0_i32_0 : i32, i32
  }
  func.func @transform_2(%arg0: i32) -> (i32, i32) {
    %c0_i32 = arith.constant 0 : i32
    %c0_i32_0 = arith.constant 0 : i32
    %c0_i32_1 = arith.constant 0 : i32
    return %c0_i32, %c0_i32_0 : i32, i32
  }
  func.func @transform_3(%arg0: i32) -> (i32, i32) {
    %c0_i32 = arith.constant 0 : i32
    %c0_i32_0 = arith.constant 0 : i32
    %c0_i32_1 = arith.constant 0 : i32
    return %c0_i32, %c0_i32_0 : i32, i32
  }
  func.func @transform_4(%arg0: i32) -> (i32, i32) {
    %c0_i32 = arith.constant 0 : i32
    %c0_i32_0 = arith.constant 0 : i32
    %c0_i32_1 = arith.constant 0 : i32
    return %c0_i32, %c0_i32_0 : i32, i32
  }
  func.func @transform_5(%arg0: i32) -> (i32, i32) {
    %c0_i32 = arith.constant 0 : i32
    %c0_i32_0 = arith.constant 0 : i32
    %c0_i32_1 = arith.constant 0 : i32
    return %c0_i32, %c0_i32_0 : i32, i32
  }
  func.func @transform_6(%arg0: i32) -> (i32, i32) {
    %c0_i32 = arith.constant 0 : i32
    %c0_i32_0 = arith.constant 0 : i32
    %c0_i32_1 = arith.constant 0 : i32
    return %c0_i32, %c0_i32_0 : i32, i32
  }
  func.func @transform_7(%arg0: i32) -> (i32, i32) {
    %c0_i32 = arith.constant 0 : i32
    %c0_i32_0 = arith.constant 0 : i32
    %c0_i32_1 = arith.constant 0 : i32
    return %c0_i32, %c0_i32_0 : i32, i32
  }
  func.func @transform_8(%arg0: i32) -> (i32, i32) {
    %c0_i32 = arith.constant 0 : i32
    %c0_i32_0 = arith.constant 0 : i32
    %c0_i32_1 = arith.constant 0 : i32
    return %c0_i32, %c0_i32_0 : i32, i32
  }
}

</mosaic_0001>

<bundles_post_ra>
// kernel: tpu_custom_call.1
= control target key start
LH: loop header
LB: loop body
LE: loop exit
PB: predicated region body
PF: predicated region fallthrough
CT: control target
= control target key end

     0   :  { %14 = vsyncpa [#allocation4], 0  ;;  %s3725_s0 = inlined_call_operand.vmem [shape: f32[64,16], index: 0, kind: input, shape index: {}]   ;;  %s3726_s1 = inlined_call_operand.vmem [shape: f32[16,384], index: 1, kind: input, shape index: {}]   ;;  %s3727_s2 = inlined_call_operand.hbm [shape: f32[128,384], index: 2, kind: input, shape index: {}]   ;;  %s3728_s3 = inlined_call_operand.vmem [shape: f32[1,384], index: 3, kind: input, shape index: {}]   ;;  %s3729_s4 = inlined_call_operand.vmem [shape: f32[1,384], index: 4, kind: input, shape index: {}]   ;;  %s3730_s5 = inlined_call_operand.hbm [shape: f32[128,128], index: 5, kind: input, shape index: {}]   ;;  %s3731_s6 = inlined_call_operand.vmem [shape: f32[1,128], index: 6, kind: input, shape index: {}]   ;;  %s3732_s7 = inlined_call_operand.hbm [shape: f32[8,128], index: 7, kind: output, shape index: {0}]   ;;  %s3733_s8 = inlined_call_operand.hbm [shape: f32[8,128], index: 8, kind: output, shape index: {1}]  }
   0x1   :  { %15 = vsyncpa [#allocation7], 0 }
   0x2   :  { %16 = vsyncpa [#allocation5], 0 }
   0x3   :  { %17 = vsyncpa [#allocation10], 0  ;;  %s3150_s27 = smov [#allocation3]   ;;  %s3054_s9 = scalar_lea.hbm %s3727_s2, 6144 }
   0x4   :  { %s27_s28 = sshll.u32 %s3150_s27, 4  ;;  %p3055_p0 = scmp.ne.s32.totalorder %s3727_s2, %s3054_s9  ;;  %s28_s28 = int_to_ptr.vmem [resolvable:$true] %s27_s28 }
   0x5   :  { %p3058_p1 = scmp.lt.u32.totalorder %s3054_s9, %s3727_s2 }
   0x7   :  { %p3060_p2 = pnand %p3058_p1, %p3055_p0 }
   0x9   :  { %3063 = shalt.err (!%p3060_p2)
}
   0xa   :  { %s3064_s14 = scalar_lea.vmem %s28_s28, 6144  ;;  %p3069_p4 = scmp.lt.s32.totalorder %s28_s28, %s28_s28 }
   0xb   :  { %p3065_p3 = scmp.ne.s32.totalorder %s28_s28, %s3064_s14  ;;  %p3070_p5 = scmp.lt.s32.totalorder %s3064_s14, %s3064_s14 }
   0xd   :  { %p3071_p6 = por %p3070_p5, %p3069_p4 }
   0xf   :  { %p3072_p7 = pnand %p3071_p6, %p3065_p3 }
  0x11   :  { %3075 = shalt.err (!%p3072_p7)
}
  0x12   :  { %s3151_s15 = smov 384   ;;  %s3152_s16 = smov 24  }
  0x13   :  { %33 = dma.hbm_to_vmem [thread:$0]  %s3727_s2, 6144, %s28_s28, [#allocation4], %s3151_s15, %s3151_s15, %s3152_s16  }
  0x14   :  { %s3153_s19 = smov [#allocation6]   ;;  %s3076_s23 = scalar_lea.hbm %s3730_s5, 2048 }
  0x15   :  { %s43_s20 = sshll.u32 %s3153_s19, 4  ;;  %p3077_p8 = scmp.ne.s32.totalorder %s3730_s5, %s3076_s23  ;;  %s44_s20 = int_to_ptr.vmem [resolvable:$true] %s43_s20 }
  0x16   :  { %p3080_p9 = scmp.lt.u32.totalorder %s3076_s23, %s3730_s5 }
  0x18   :  { %p3082_p10 = pnand %p3080_p9, %p3077_p8 }
  0x1a   :  { %3085 = shalt.err (!%p3082_p10)
}
  0x1b   :  { %s3086_s29 = scalar_lea.vmem %s44_s20, 2048  ;;  %p3091_p12 = scmp.lt.s32.totalorder %s44_s20, %s44_s20 }
  0x1c   :  { %p3087_p11 = scmp.ne.s32.totalorder %s44_s20, %s3086_s29  ;;  %p3092_p13 = scmp.lt.s32.totalorder %s3086_s29, %s3086_s29 }
  0x1e   :  { %p3093_p0 = por %p3092_p13, %p3091_p12 }
  0x20   :  { %p3094_p1 = pnand %p3093_p0, %p3087_p11 }
  0x22   :  { %3097 = shalt.err (!%p3094_p1)
}
  0x23   :  { %s3154_s2 = smov 128   ;;  %s3155_s28 = smov 8  }
  0x24   :  { %49 = dma.hbm_to_vmem [thread:$0]  %s3730_s5, 2048, %s44_s20, [#allocation7], %s3154_s2, %s3154_s2, %s3155_s28  }
  0x25   :  { %3142 = dma.done.wait [#allocation4], 6144  }
  0x26   :  { %3143 = vsyncadd [#allocation4], 4294961152 }
  0x27   :  { %3144 = dma.done.wait [#allocation7], 2048  }
  0x28   :  { %3145 = vsyncadd [#allocation7], 4294965248  ;;  %v3156_v0 = vmov 0.0   ;;  %v67_v1 = vld [vmem:[%s3726_s1 + $0x8] sm:$0xff]  ;;  %v70_v2 = vld [vmem:[%s3726_s1 + $0x20] sm:$0xff]  ;;  %vm89_vm0 = vcmask 130048  }
  0x29   :  { %178 = vmatprep.mubr.f32.mxu0 %v3156_v0  ;;  %v66_v3 = vld [vmem:[%s3726_s1] sm:$0xff]  ;;  %v2431_v4 = vpack.c.bf16 %v70_v2, %v67_v1  ;;  %v69_v5 = vld [vmem:[%s3726_s1 + $0x18] sm:$0xff]  ;;  %v360_v9 = vld [vmem:[#allocation3 + $0x20] sm:$0xff]  ;;  %v3157_v48 = vmov 0.0|0.0   ;;  %vm3158_vm1 = vmmov 0  }
  0x2a   :  { %v58_v6 = vld [vmem:[%s3725_s0] sm:$0xff]  ;;  %v357_v7 = vld [vmem:[#allocation3 + $0x8] sm:$0xff]  ;;  %v2433_v8 = vpack.c.bf16 %v69_v5, %v66_v3  ;;  %v356_v10 = vld [vmem:[#allocation3] sm:$0xff] }
  0x2b   :  { %v359_v11 = vld [vmem:[#allocation3 + $0x18] sm:$0xff]  ;;  %2104 = vmatprep.mubr.msk.f32.mxu1 %vm89_vm0, %v58_v6  ;;  %2432 = vmatprep.subr.bf16.mxu0 %v2431_v4  ;;  %v3247_v12 = vpack.c.bf16 %v360_v9, %v357_v7  ;;  %v366_v14 = vld [vmem:[#allocation3 + $0x50] sm:$0xff]  ;;  %v365_v18 = vld [vmem:[#allocation3 + $0x48] sm:$0xff] }
  0x2c   :  { %v363_v13 = vld [vmem:[#allocation3 + $0x38] sm:$0xff]  ;;  %2434 = vmatpush1.bf16.msra.mxu0 %v2433_v8  ;;  %v3249_v15 = vpack.c.bf16 %v359_v11, %v356_v10  ;;  %v362_v17 = vld [vmem:[#allocation3 + $0x30] sm:$0xff]  ;;  %v369_v19 = vld [vmem:[#allocation3 + $0x68] sm:$0xff] }
  0x2d   :  { %2440 = vmatprep.subr.bf16.mxu0 %v3247_v12  ;;  %v3252_v16 = vpack.c.bf16 %v366_v14, %v363_v13  ;;  %v372_v20 = vld [vmem:[#allocation3 + $0x80] sm:$0xff]  ;;  %v59_v21 = vld [vmem:[%s3725_s0 + $0x8] sm:$0xff]  ;;  %v3260_v22 = vpack.c.bf16 %v365_v18, %v362_v17  ;;  %v378_v27 = vld [vmem:[#allocation3 + $0xb0] sm:$0xff] }
  0x2e   :  { %v3263_v23 = vpack.c.bf16 %v372_v20, %v369_v19  ;;  %v368_v24 = vld [vmem:[#allocation3 + $0x60] sm:$0xff]  ;;  %v371_v25 = vld [vmem:[#allocation3 + $0x78] sm:$0xff]  ;;  %v374_v34 = vld [vmem:[#allocation3 + $0x90] sm:$0xff] }
  0x2f   :  { %1903 = vmatmul.mubr.msk.f32.vlgmr.msra.gmra.mrb[0].mxu0 %vm89_vm0, %v58_v6  ;;  %v375_v26 = vld [vmem:[#allocation3 + $0x98] sm:$0xff]  ;;  %v68_v28 = vld [vmem:[%s3726_s1 + $0x10] sm:$0xff]  ;;  %v3277_v31 = vpack.c.bf16 %v371_v25, %v368_v24  ;;  %v377_v35 = vld [vmem:[#allocation3 + $0xa8] sm:$0xff] }
  0x30   :  { %2442 = vmatpush1.bf16.msra.mxu0 %v3249_v15  ;;  %184 = vmatprep.mubr.f32.mxu0 %v3156_v0  ;;  %v71_v29 = vld [vmem:[%s3726_s1 + $0x28] sm:$0xff]  ;;  %v60_v30 = vld [vmem:[%s3725_s0 + $0x10] sm:$0xff]  ;;  %v3280_v33 = vpack.c.bf16 %v378_v27, %v375_v26  ;;  %v358_v36 = vld [vmem:[#allocation3 + $0x10] sm:$0xff]  ;;  %v3290_v42 = vpack.c.bf16 %v377_v35, %v374_v34  ;;  %v74_v35 = vlaneseq }
  0x31   :  { %2444 = vmatprep.subr.bf16.mxu0 %v3252_v16  ;;  %v2435_v32 = vpack.c.bf16 %v71_v29, %v68_v28  ;;  %v381_v37 = vld [vmem:[#allocation3 + $0xc8] sm:$0xff]  ;;  %v384_v38 = vld [vmem:[#allocation3 + $0xe0] sm:$0xff]  ;;  %v367_v44 = vld [vmem:[#allocation3 + $0x58] sm:$0xff] }
  0x32   :  { %v361_v39 = vld [vmem:[#allocation3 + $0x28] sm:$0xff]  ;;  %v364_v43 = vld [vmem:[#allocation3 + $0x40] sm:$0xff]  ;;  %v3293_v45 = vpack.c.bf16 %v384_v38, %v381_v37  ;;  %v383_v47 = vld [vmem:[#allocation3 + $0xd8] sm:$0xff] }
  0x33   :  { %1904 = vmatmul.mubr.msk.f32.gmra.mrb[2].mxu0 %vm89_vm0, %v59_v21  ;;  %2436 = vmatprep.subr.bf16.mxu1 %v2435_v32  ;;  %v3283_v40 = vpack.c.bf16 %v361_v39, %v358_v36  ;;  %v61_v41 = vld [vmem:[%s3725_s0 + $0x18] sm:$0xff]  ;;  %v380_v46 = vld [vmem:[#allocation3 + $0xc0] sm:$0xff]  ;;  %v387_v49 = vld [vmem:[#allocation3 + $0xf8] sm:$0xff]  ;;  %v3299_v51 = vpack.c.bf16 %v367_v44, %v364_v43  ;;  %v75_v36 = vshrl.u32 %v74_v35, 7 }
  0x34   :  { %2446 = vmatpush1.bf16.msra.mxu0 %v3260_v22  ;;  %190 = vmatprep.mubr.f32.mxu0 %v3156_v0  ;;  %v390_v50 = vld [vmem:[#allocation3 + $0x110] sm:$0xff]  ;;  %v3306_v53 = vpack.c.bf16 %v383_v47, %v380_v46  ;;  %v373_v55 = vld [vmem:[#allocation3 + $0x88] sm:$0xff]  ;;  %v396_v60 = vld [vmem:[#allocation3 + $0x140] sm:$0xff] }
  0x35   :  { %2448 = vmatprep.subr.bf16.mxu0 %v3263_v23  ;;  %2438 = vmatpush3.bf16.msra.mxu1 %v2435_v32  ;;  %v62_v52 = vld [vmem:[%s3725_s0 + $0x20] sm:$0xff]  ;;  %v3309_v56 = vpack.c.bf16 %v390_v50, %v387_v49  ;;  %v389_v58 = vld [vmem:[#allocation3 + $0x108] sm:$0xff]  ;;  %v63_v62 = vld [vmem:[%s3725_s0 + $0x28] sm:$0xff]  ;;  %v84_v37 = vsub.s32 2, %v75_v36  ;;  %v76_v50 = vsub.s32 0, %v75_v36 }
  0x36   :  { %2471 = vmatprep.subr.bf16.mxu1 %v3157_v48  ;;  %v370_v54 = vld [vmem:[#allocation3 + $0x70] sm:$0xff]  ;;  %v393_v59 = vld [vmem:[#allocation3 + $0x128] sm:$0xff]  ;;  %v376_v1 = vld [vmem:[#allocation3 + $0xa0] sm:$0xff] }
  0x37   :  { %1905 = vmatmul.mubr.msk.f32.gmra.mrb[4].mxu0 %vm89_vm0, %v60_v30  ;;  %v386_v57 = vld [vmem:[#allocation3 + $0xf0] sm:$0xff]  ;;  %v3315_v61 = vpack.c.bf16 %v373_v55, %v370_v54  ;;  %v379_v2 = vld [vmem:[#allocation3 + $0xb8] sm:$0xff]  ;;  %v3325_v3 = vpack.c.bf16 %v396_v60, %v393_v59  ;;  %v392_v4 = vld [vmem:[#allocation3 + $0x120] sm:$0xff]  ;;  %v80_v55 = vsub.s32 1, %v75_v36 }
  0x38   :  { %2450 = vmatpush1.bf16.msra.mxu0 %v3277_v31  ;;  %196 = vmatprep.mubr.f32.mxu0 %v3156_v0  ;;  %v3322_v63 = vpack.c.bf16 %v389_v58, %v386_v57  ;;  %v395_v5 = vld [vmem:[#allocation3 + $0x138] sm:$0xff]  ;;  %v402_v7 = vld [vmem:[#allocation3 + $0x170] sm:$0xff]  ;;  %v3331_v8 = vpack.c.bf16 %v379_v2, %v376_v1  ;;  %v64_v9 = vld [vmem:[%s3725_s0 + $0x30] sm:$0xff] }
  0x39   :  { %2452 = vmatprep.subr.bf16.mxu0 %v3280_v33  ;;  %2105 = vmatmul.mubr.msk.f32.vlgmr.msra.gmra.mrb[0].mxu1 %vm89_vm0, %v59_v21  ;;  %v399_v6 = vld [vmem:[#allocation3 + $0x158] sm:$0xff]  ;;  %v3338_v10 = vpack.c.bf16 %v395_v5, %v392_v4  ;;  %v382_v11 = vld [vmem:[#allocation3 + $0xd0] sm:$0xff]  ;;  %v385_v13 = vld [vmem:[#allocation3 + $0xe8] sm:$0xff] }
  0x3a   :  { %2473 = vmatpush3.bf16.msra.mxu1 %v3283_v40  ;;  %2107 = vmatprep.mubr.msk.f32.mxu1 %vm89_vm0, %v60_v30  ;;  %v3341_v14 = vpack.c.bf16 %v402_v7, %v399_v6  ;;  %v398_v17 = vld [vmem:[#allocation3 + $0x150] sm:$0xff]  ;;  %v401_v18 = vld [vmem:[#allocation3 + $0x168] sm:$0xff]  ;;  %v3347_v19 = vpack.c.bf16 %v385_v13, %v382_v11  ;;  %v388_v24 = vld [vmem:[#allocation3 + $0x100] sm:$0xff] }
  0x3b   :  { %1906 = vmatmul.mubr.msk.f32.gmra.mrb[6].mxu0 %vm89_vm0, %v61_v41  ;;  %2474 = vmatprep.subr.bf16.mxu1 %v3157_v48  ;;  %v65_v20 = vld [vmem:[%s3725_s0 + $0x38] sm:$0xff]  ;;  %v3354_v21 = vpack.c.bf16 %v401_v18, %v398_v17  ;;  %v391_v25 = vld [vmem:[#allocation3 + $0x118] sm:$0xff]  ;;  %v394_v27 = vld [vmem:[#allocation3 + $0x130] sm:$0xff] }
  0x3c   :  { %2454 = vmatpush1.bf16.msra.mxu0 %v3290_v42  ;;  %202 = vmatprep.mubr.f32.mxu0 %v3156_v0  ;;  %v3361_v26 = vpack.c.bf16 %v391_v25, %v388_v24  ;;  %v397_v28 = vld [vmem:[#allocation3 + $0x148] sm:$0xff]  ;;  %v400_v30 = vld [vmem:[#allocation3 + $0x160] sm:$0xff]  ;;  %v403_v32 = vld [vmem:[#allocation3 + $0x178] sm:$0xff] }
  0x3d   :  { %2456 = vmatprep.subr.bf16.mxu0 %v3293_v45  ;;  %2108 = vmatmul.mubr.msk.f32.gmra.mrb[2].mxu1 %vm89_vm0, %v61_v41  ;;  %v3371_v29 = vpack.c.bf16 %v397_v28, %v394_v27  ;;  %v3380_v34 = vpack.c.bf16 %v403_v32, %v400_v30  ;;  %v72_v38 = vld [vmem:[%s3728_s3] sm:$0x7]  ;;  %s3159_s3 = smov [#allocation8]  }
  0x3e   :  { %2476 = vmatpush3.bf16.msra.mxu1 %v3299_v51  ;;  %2110 = vmatprep.mubr.msk.f32.mxu1 %vm89_vm0, %v62_v52  ;;  %v85_v39 = vrot.slane %v72_v38, %v84_v37  ;;  %v404_v54 = vld [vmem:[%s3729_s4] sm:$0x7]  ;;  %v77_v57 = vrot.slane %v72_v38, %v76_v50  ;;  %v81_v60 = vrot.slane %v72_v38, %v80_v55  ;;  %s1872_s4 = sshll.u32 %s3159_s3, 4  ;;  %s1873_s4 = int_to_ptr.vmem [resolvable:$true] %s1872_s4 }
  0x3f   :  { %1907 = vmatmul.mubr.msk.f32.gmra.mrb[8].mxu0 %vm89_vm0, %v62_v52  ;;  %2477 = vmatprep.subr.bf16.mxu1 %v3157_v48  ;;  %v415_v58 = vrot.slane %v404_v54, %v76_v50  ;;  %v3444_v36 = vrot.slane %v404_v54, %v84_v37  ;;  %s3098_s5 = scalar_lea.vmem %s1873_s4, 128  ;;  %p3103_p3 = scmp.lt.s32.totalorder %s1873_s4, %s1873_s4 }
  0x40   :  { %2458 = vmatpush1.bf16.msra.mxu0 %v3306_v53  ;;  %208 = vmatprep.mubr.f32.mxu0 %v3156_v0  ;;  %p3099_p2 = scmp.ne.s32.totalorder %s1873_s4, %s3098_s5  ;;  %p3104_p4 = scmp.lt.s32.totalorder %s3098_s5, %s3098_s5 }
  0x41   :  { %2460 = vmatprep.subr.bf16.mxu0 %v3309_v56  ;;  %2111 = vmatmul.mubr.msk.f32.gmra.mrb[4].mxu1 %vm89_vm0, %v63_v62  ;;  %v3432_v4 = vadd.f32 %v415_v58, %v77_v57 }
  0x42   :  { %2479 = vmatpush3.bf16.msra.mxu1 %v3315_v61  ;;  %2113 = vmatprep.mubr.msk.f32.mxu1 %vm89_vm0, %v64_v9  ;;  %p3105_p5 = por %p3104_p4, %p3103_p3 }
  0x43   :  { %1908 = vmatmul.mubr.msk.f32.gmra.mrb[10].mxu0 %vm89_vm0, %v63_v62  ;;  %2480 = vmatprep.subr.bf16.mxu1 %v3157_v48  ;;  %v419_v62 = vrot.slane %v404_v54, %v80_v55 }
  0x44   :  { %2462 = vmatpush1.bf16.msra.mxu0 %v3322_v63  ;;  %214 = vmatprep.mubr.f32.mxu0 %v3156_v0  ;;  %p3106_p6 = pnand %p3105_p5, %p3099_p2 }
  0x45   :  { %2464 = vmatprep.subr.bf16.mxu0 %v3325_v3  ;;  %2114 = vmatmul.mubr.msk.f32.gmra.mrb[6].mxu1 %vm89_vm0, %v65_v20 }
  0x46   :  { %2482 = vmatpush3.bf16.msra.mxu1 %v3331_v8  ;;  %2148 = vmatprep.mubr.msk.f32.mxu1 %vm3158_vm1, %v3156_v0 }
  0x47   :  { %1909 = vmatmul.mubr.msk.f32.gmra.mrb[12].mxu0 %vm89_vm0, %v64_v9  ;;  %2483 = vmatprep.subr.bf16.mxu1 %v3157_v48  ;;  %v3436_v9 = vadd.f32 %v419_v62, %v81_v60 }
  0x48   :  { %2466 = vmatpush1.bf16.msra.mxu0 %v3338_v10  ;;  %220 = vmatprep.mubr.f32.mxu0 %v3156_v0 }
  0x49   :  { %2468 = vmatprep.subr.bf16.mxu0 %v3341_v14 }
  0x4a   :  { %2485 = vmatpush3.bf16.msra.mxu1 %v3347_v19 }
  0x4b   :  { %1910 = vmatmul.mubr.msk.f32.gmra.mrb[14].mxu0 %vm89_vm0, %v65_v20  ;;  %2486 = vmatprep.subr.bf16.mxu1 %v3157_v48 }
  0x4c   :  { %2470 = vmatpush1.bf16.msra.mxu0 %v3354_v21  ;;  %491 = vmatprep.mubr.f32.mxu0 %v3156_v0 }
  0x4d   :  { %2496 = vmatprep.subr.bf16.mxu0 %v3247_v12 }
  0x4e   :  { %2488 = vmatpush3.bf16.msra.mxu1 %v3361_v26 }
  0x4f   :  { %492 = vmatmul.mubr.f32.vlgmr.msra.gmra.mrb[0].mxu0 %v3156_v0  ;;  %2489 = vmatprep.subr.bf16.mxu1 %v3157_v48 }
  0x50   :  { %2498 = vmatpush1.bf16.msra.mxu0 %v3249_v15  ;;  %659 = vmatprep.mubr.f32.mxu0 %v3156_v0 }
  0x51   :  { %2500 = vmatprep.subr.bf16.mxu0 %v3252_v16 }
  0x52   :  { %2491 = vmatpush3.bf16.msra.mxu1 %v3371_v29 }
  0x53   :  { %2492 = vmatprep.subr.bf16.mxu1 %v3157_v48 }
  0x54   :  { %2502 = vmatpush1.bf16.msra.mxu0 %v3260_v22 }
  0x55   :  { %2504 = vmatprep.subr.bf16.mxu0 %v3263_v23 }
  0x56   :  { %2494 = vmatpush3.bf16.msra.mxu1 %v3380_v34 }
  0x57   :  { %2527 = vmatprep.subr.bf16.mxu1 %v3157_v48 }
  0x58   :  { %2506 = vmatpush1.bf16.msra.mxu0 %v3277_v31 }
  0x59   :  { %2149 = vmatmul.mubr.f32.vlgmr.msra.gmra.mrb[8].mxu1 %v3156_v0  ;;  %2508 = vmatprep.subr.bf16.mxu0 %v3280_v33 }
  0x5a   :  { %2529 = vmatpush3.bf16.msra.mxu1 %v3283_v40  ;;  %2183 = vmatprep.mubr.msk.f32.mxu1 %vm3158_vm1, %v3156_v0 }
  0x5b   :  { %2530 = vmatprep.subr.bf16.mxu1 %v3157_v48 }
  0x5c   :  { %2510 = vmatpush1.bf16.msra.mxu0 %v3290_v42 }
  0x5d   :  { %2512 = vmatprep.subr.bf16.mxu0 %v3293_v45 }
  0x5e   :  { %2532 = vmatpush3.bf16.msra.mxu1 %v3299_v51 }
  0x5f   :  { %2533 = vmatprep.subr.bf16.mxu1 %v3157_v48 }
  0x60   :  { %2514 = vmatpush1.bf16.msra.mxu0 %v3306_v53 }
  0x61   :  { %2516 = vmatprep.subr.bf16.mxu0 %v3309_v56 }
  0x62   :  { %2535 = vmatpush3.bf16.msra.mxu1 %v3315_v61 }
  0x63   :  { %2536 = vmatprep.subr.bf16.mxu1 %v3157_v48 }
  0x64   :  { %2518 = vmatpush1.bf16.msra.mxu0 %v3322_v63 }
  0x65   :  { %2520 = vmatprep.subr.bf16.mxu0 %v3325_v3 }
  0x66   :  { %2538 = vmatpush3.bf16.msra.mxu1 %v3331_v8 }
  0x67   :  { %2539 = vmatprep.subr.bf16.mxu1 %v3157_v48 }
  0x68   :  { %2522 = vmatpush1.bf16.msra.mxu0 %v3338_v10 }
  0x69   :  { %2524 = vmatprep.subr.bf16.mxu0 %v3341_v14 }
  0x6a   :  { %2541 = vmatpush3.bf16.msra.mxu1 %v3347_v19 }
  0x6b   :  { %2542 = vmatprep.subr.bf16.mxu1 %v3157_v48 }
  0x6c   :  { %2526 = vmatpush1.bf16.msra.mxu0 %v3354_v21 }
  0x6d   :  { %2552 = vmatprep.subr.bf16.mxu0 %v3247_v12 }
  0x6e   :  { %2544 = vmatpush3.bf16.msra.mxu1 %v3361_v26 }
  0x6f   :  { %2545 = vmatprep.subr.bf16.mxu1 %v3157_v48 }
  0x72   :  { %2547 = vmatpush3.bf16.msra.mxu1 %v3371_v29 }
  0x73   :  { %2548 = vmatprep.subr.bf16.mxu1 %v3157_v48 }
  0x76   :  { %2550 = vmatpush3.bf16.msra.mxu1 %v3380_v34 }
  0x77   :  { %2583 = vmatprep.subr.bf16.mxu1 %v3157_v48 }
 0x10c   :  { %v2106_v41 = vpop.f32.mrb[0].mxu1 }
 0x10d   :  { %v3421_v43 = vadd.f32 %v2106_v41, %v85_v39  ;;  %v293_v44 = vpop.f32.mrb[1].mxu1 }
 0x10e   :  { %v294_v50 = vadd.f32 %v293_v44, %v85_v39 }
 0x110   :  { %v2109_v46 = vpop.f32.mrb[2].mxu1 }
 0x111   :  { %v3423_v47 = vadd.f32 %v2109_v46, %v85_v39  ;;  %v303_v49 = vpop.f32.mrb[3].mxu1 }
 0x112   :  { %v3425_v52 = vadd.f32 %v303_v49, %v85_v39 }
 0x114   :  { %v2112_v59 = vpop.f32.mrb[4].mxu1 }
 0x115   :  { %v3430_v1 = vadd.f32 %v2112_v59, %v85_v39  ;;  %v313_v2 = vpop.f32.mrb[5].mxu1 }
 0x116   :  { %v3434_v5 = vadd.f32 %v313_v2, %v85_v39 }
 0x118   :  { %v2115_v6 = vpop.f32.mrb[6].mxu1 }
 0x119   :  { %v3438_v11 = vadd.f32 %v2115_v6, %v85_v39  ;;  %v323_v13 = vpop.f32.mrb[7].mxu1 }
 0x11a   :  { %v3441_v20 = vadd.f32 %v323_v13, %v85_v39 }
 0x122   :  { %v493_v7 = vpop.f32.mrb[0].mxu0 }
 0x123   :  { %v2912_v17 = vadd.f32 %v3432_v4, %v493_v7  ;;  %v495_v18 = vpop.f32.mrb[1].mxu0 }
 0x124   :  { %v2914_v25 = vadd.f32 %v3436_v9, %v495_v18 }
 0x125   :  { %v1919_v24 = vmul.f32 -1.442695, %v2912_v17 }
 0x126   :  { %v1920_v27 = vmul.f32 -1.442695, %v2914_v25 }
 0x127   :  { %2970 = vpow2.f32 %v1919_v24 }
 0x128   :  { %2972 = vpow2.f32 %v1920_v27 }
 0x12c   :  { %v564_v28 = vpop.f32.mrb[8].mxu1 }
 0x12d   :  { %v2150_v30 = vpop.f32.mrb[9].mxu1  ;;  %v565_v46 = vadd.f32 %v564_v28, %v3444_v36 }
 0x131   :  { %v2971_v32 = vpop.eup %2970 }
 0x132   :  { %v572_v35 = vadd.f32 1.0, %v2971_v32  ;;  %v2973_v38 = vpop.eup %2972 }
 0x133   :  { %v579_v41 = vadd.f32 1.0, %v2973_v38 }
 0x134   :  { %2974 = vrcp.f32 %v572_v35 }
 0x135   :  { %2976 = vrcp.f32 %v579_v41 }
 0x13e   :  { %v2975_v49 = vpop.eup %2974 }
 0x13f   :  { %v582_v55 = vmul.f32 %v2975_v49, %v565_v46  ;;  %v2977_v58 = vpop.eup %2976 }
 0x140   :  { %v585_v59 = vsub.f32 1.0, %v2977_v58  ;;  %v587_v2 = vmul.f32 0.0, %v2977_v58 }
 0x141   :  { %v583_v57 = vadd.f32 %v582_v55, %v294_v50 }
 0x143   :  { %2978 = vtanh.f32 %v583_v57 }
 0x14d   :  { %v2979_v60 = vpop.eup %2978 }
 0x14e   :  { %v586_v62 = vmul.f32 %v2979_v60, %v585_v59 }
 0x150   :  { %v588_v6 = vadd.f32 %v587_v2, %v586_v62 }
 0x152   :  { %660 = vmatmul.mubr.f32.vlgmr.msra.gmra.mrb[2].mxu0 %v588_v6  ;;  %2184 = vmatmul.mubr.f32.vlgmr.msra.gmra.mrb[10].mxu1 %v588_v6 }
 0x153   :  { %2554 = vmatpush1.bf16.msra.mxu0 %v3249_v15  ;;  %2585 = vmatpush3.bf16.msra.mxu1 %v3283_v40 }
 0x154   :  { %2556 = vmatprep.subr.bf16.mxu0 %v3252_v16  ;;  %2586 = vmatprep.subr.bf16.mxu1 %v3157_v48 }
 0x155   :  { %827 = vmatprep.mubr.f32.mxu0 %v3156_v0  ;;  %2218 = vmatprep.mubr.msk.f32.mxu1 %vm3158_vm1, %v3156_v0 }
 0x157   :  { %2558 = vmatpush1.bf16.msra.mxu0 %v3260_v22  ;;  %2588 = vmatpush3.bf16.msra.mxu1 %v3299_v51 }
 0x158   :  { %2560 = vmatprep.subr.bf16.mxu0 %v3263_v23  ;;  %2589 = vmatprep.subr.bf16.mxu1 %v3157_v48 }
 0x15b   :  { %2562 = vmatpush1.bf16.msra.mxu0 %v3277_v31  ;;  %2591 = vmatpush3.bf16.msra.mxu1 %v3315_v61 }
 0x15c   :  { %2564 = vmatprep.subr.bf16.mxu0 %v3280_v33  ;;  %2592 = vmatprep.subr.bf16.mxu1 %v3157_v48 }
 0x15f   :  { %2566 = vmatpush1.bf16.msra.mxu0 %v3290_v42  ;;  %2594 = vmatpush3.bf16.msra.mxu1 %v3331_v8 }
 0x160   :  { %2568 = vmatprep.subr.bf16.mxu0 %v3293_v45  ;;  %2595 = vmatprep.subr.bf16.mxu1 %v3157_v48 }
 0x163   :  { %2570 = vmatpush1.bf16.msra.mxu0 %v3306_v53  ;;  %2597 = vmatpush3.bf16.msra.mxu1 %v3347_v19 }
 0x164   :  { %2572 = vmatprep.subr.bf16.mxu0 %v3309_v56  ;;  %2598 = vmatprep.subr.bf16.mxu1 %v3157_v48 }
 0x167   :  { %2574 = vmatpush1.bf16.msra.mxu0 %v3322_v63  ;;  %2600 = vmatpush3.bf16.msra.mxu1 %v3361_v26 }
 0x168   :  { %2576 = vmatprep.subr.bf16.mxu0 %v3325_v3  ;;  %2601 = vmatprep.subr.bf16.mxu1 %v3157_v48 }
 0x16b   :  { %2578 = vmatpush1.bf16.msra.mxu0 %v3338_v10  ;;  %2603 = vmatpush3.bf16.msra.mxu1 %v3371_v29 }
 0x16c   :  { %2580 = vmatprep.subr.bf16.mxu0 %v3341_v14  ;;  %2604 = vmatprep.subr.bf16.mxu1 %v3157_v48 }
 0x16f   :  { %2582 = vmatpush1.bf16.msra.mxu0 %v3354_v21  ;;  %2606 = vmatpush3.bf16.msra.mxu1 %v3380_v34 }
 0x170   :  { %2608 = vmatprep.subr.bf16.mxu0 %v3247_v12  ;;  %2639 = vmatprep.subr.bf16.mxu1 %v3157_v48 }
 0x225   :  { %v661_v37 = vpop.f32.mrb[2].mxu0  ;;  %v732_v39 = vpop.f32.mrb[10].mxu1 }
 0x226   :  { %v2916_v44 = vadd.f32 %v3432_v4, %v661_v37  ;;  %v663_v54 = vpop.f32.mrb[3].mxu0  ;;  %v2185_v7 = vpop.f32.mrb[11].mxu1  ;;  %v733_v30 = vadd.f32 %v732_v39, %v3444_v36 }
 0x227   :  { %v2918_v17 = vadd.f32 %v3436_v9, %v663_v54 }
 0x228   :  { %v1921_v13 = vmul.f32 -1.442695, %v2916_v44 }
 0x229   :  { %v1922_v18 = vmul.f32 -1.442695, %v2918_v17 }
 0x22a   :  { %2980 = vpow2.f32 %v1921_v13 }
 0x22b   :  { %2982 = vpow2.f32 %v1922_v18 }
 0x234   :  { %v2981_v24 = vpop.eup %2980 }
 0x235   :  { %v740_v25 = vadd.f32 1.0, %v2981_v24  ;;  %v2983_v27 = vpop.eup %2982 }
 0x236   :  { %v747_v28 = vadd.f32 1.0, %v2983_v27 }
 0x237   :  { %2984 = vrcp.f32 %v740_v25 }
 0x238   :  { %2986 = vrcp.f32 %v747_v28 }
 0x241   :  { %v2985_v32 = vpop.eup %2984 }
 0x242   :  { %v750_v35 = vmul.f32 %v2985_v32, %v733_v30  ;;  %v2987_v41 = vpop.eup %2986 }
 0x243   :  { %v753_v46 = vsub.f32 1.0, %v2987_v41  ;;  %v755_v55 = vmul.f32 %v2987_v41, %v588_v6 }
 0x244   :  { %v751_v38 = vadd.f32 %v750_v35, %v3421_v43 }
 0x246   :  { %2988 = vtanh.f32 %v751_v38 }
 0x250   :  { %v2989_v49 = vpop.eup %2988 }
 0x251   :  { %v754_v50 = vmul.f32 %v2989_v49, %v753_v46 }
 0x253   :  { %v756_v57 = vadd.f32 %v755_v55, %v754_v50 }
 0x255   :  { %828 = vmatmul.mubr.f32.vlgmr.msra.gmra.mrb[4].mxu0 %v756_v57  ;;  %2219 = vmatmul.mubr.f32.vlgmr.msra.gmra.mrb[12].mxu1 %v756_v57 }
 0x256   :  { %2610 = vmatpush1.bf16.msra.mxu0 %v3249_v15  ;;  %2641 = vmatpush3.bf16.msra.mxu1 %v3283_v40 }
 0x257   :  { %2612 = vmatprep.subr.bf16.mxu0 %v3252_v16  ;;  %2642 = vmatprep.subr.bf16.mxu1 %v3157_v48 }
 0x258   :  { %995 = vmatprep.mubr.f32.mxu0 %v3156_v0  ;;  %2253 = vmatprep.mubr.msk.f32.mxu1 %vm3158_vm1, %v3156_v0 }
 0x25a   :  { %2614 = vmatpush1.bf16.msra.mxu0 %v3260_v22  ;;  %2644 = vmatpush3.bf16.msra.mxu1 %v3299_v51 }
 0x25b   :  { %2616 = vmatprep.subr.bf16.mxu0 %v3263_v23  ;;  %2645 = vmatprep.subr.bf16.mxu1 %v3157_v48 }
 0x25e   :  { %2618 = vmatpush1.bf16.msra.mxu0 %v3277_v31  ;;  %2647 = vmatpush3.bf16.msra.mxu1 %v3315_v61 }
 0x25f   :  { %2620 = vmatprep.subr.bf16.mxu0 %v3280_v33  ;;  %2648 = vmatprep.subr.bf16.mxu1 %v3157_v48 }
 0x262   :  { %2622 = vmatpush1.bf16.msra.mxu0 %v3290_v42  ;;  %2650 = vmatpush3.bf16.msra.mxu1 %v3331_v8 }
 0x263   :  { %2624 = vmatprep.subr.bf16.mxu0 %v3293_v45  ;;  %2651 = vmatprep.subr.bf16.mxu1 %v3157_v48 }
 0x266   :  { %2626 = vmatpush1.bf16.msra.mxu0 %v3306_v53  ;;  %2653 = vmatpush3.bf16.msra.mxu1 %v3347_v19 }
 0x267   :  { %2628 = vmatprep.subr.bf16.mxu0 %v3309_v56  ;;  %2654 = vmatprep.subr.bf16.mxu1 %v3157_v48 }
 0x26a   :  { %2630 = vmatpush1.bf16.msra.mxu0 %v3322_v63  ;;  %2656 = vmatpush3.bf16.msra.mxu1 %v3361_v26 }
 0x26b   :  { %2632 = vmatprep.subr.bf16.mxu0 %v3325_v3  ;;  %2657 = vmatprep.subr.bf16.mxu1 %v3157_v48 }
 0x26e   :  { %2634 = vmatpush1.bf16.msra.mxu0 %v3338_v10  ;;  %2659 = vmatpush3.bf16.msra.mxu1 %v3371_v29 }
 0x26f   :  { %2636 = vmatprep.subr.bf16.mxu0 %v3341_v14  ;;  %2660 = vmatprep.subr.bf16.mxu1 %v3157_v48 }
 0x272   :  { %2638 = vmatpush1.bf16.msra.mxu0 %v3354_v21  ;;  %2662 = vmatpush3.bf16.msra.mxu1 %v3380_v34 }
 0x273   :  { %2664 = vmatprep.subr.bf16.mxu0 %v3247_v12  ;;  %2695 = vmatprep.subr.bf16.mxu1 %v3157_v48 }
 0x328   :  { %v829_v43 = vpop.f32.mrb[4].mxu0  ;;  %v900_v58 = vpop.f32.mrb[12].mxu1 }
 0x329   :  { %v2920_v59 = vadd.f32 %v3432_v4, %v829_v43  ;;  %v831_v60 = vpop.f32.mrb[5].mxu0  ;;  %v2220_v62 = vpop.f32.mrb[13].mxu1  ;;  %v901_v13 = vadd.f32 %v900_v58, %v3444_v36 }
 0x32a   :  { %v2922_v6 = vadd.f32 %v3436_v9, %v831_v60 }
 0x32b   :  { %v1923_v2 = vmul.f32 -1.442695, %v2920_v59 }
 0x32c   :  { %v1924_v37 = vmul.f32 -1.442695, %v2922_v6 }
 0x32d   :  { %2990 = vpow2.f32 %v1923_v2 }
 0x32e   :  { %2992 = vpow2.f32 %v1924_v37 }
 0x337   :  { %v2991_v39 = vpop.eup %2990 }
 0x338   :  { %v908_v44 = vadd.f32 1.0, %v2991_v39  ;;  %v2993_v54 = vpop.eup %2992 }
 0x339   :  { %v915_v7 = vadd.f32 1.0, %v2993_v54 }
 0x33a   :  { %2994 = vrcp.f32 %v908_v44 }
 0x33b   :  { %2996 = vrcp.f32 %v915_v7 }
 0x344   :  { %v2995_v17 = vpop.eup %2994 }
 0x345   :  { %v918_v18 = vmul.f32 %v2995_v17, %v901_v13  ;;  %v2997_v25 = vpop.eup %2996 }
 0x346   :  { %v921_v27 = vsub.f32 1.0, %v2997_v25  ;;  %v923_v32 = vmul.f32 %v2997_v25, %v756_v57 }
 0x347   :  { %v919_v24 = vadd.f32 %v918_v18, %v3425_v52 }
 0x349   :  { %2998 = vtanh.f32 %v919_v24 }
 0x353   :  { %v2999_v28 = vpop.eup %2998 }
 0x354   :  { %v922_v30 = vmul.f32 %v2999_v28, %v921_v27 }
 0x356   :  { %v924_v35 = vadd.f32 %v923_v32, %v922_v30 }
 0x358   :  { %996 = vmatmul.mubr.f32.vlgmr.msra.gmra.mrb[6].mxu0 %v924_v35  ;;  %2254 = vmatmul.mubr.f32.vlgmr.msra.gmra.mrb[14].mxu1 %v924_v35 }
 0x359   :  { %2666 = vmatpush1.bf16.msra.mxu0 %v3249_v15  ;;  %2697 = vmatpush3.bf16.msra.mxu1 %v3283_v40 }
 0x35a   :  { %2668 = vmatprep.subr.bf16.mxu0 %v3252_v16  ;;  %2698 = vmatprep.subr.bf16.mxu1 %v3157_v48 }
 0x35b   :  { %1163 = vmatprep.mubr.f32.mxu0 %v3156_v0  ;;  %2288 = vmatprep.mubr.msk.f32.mxu1 %vm3158_vm1, %v3156_v0 }
 0x35d   :  { %2670 = vmatpush1.bf16.msra.mxu0 %v3260_v22  ;;  %2700 = vmatpush3.bf16.msra.mxu1 %v3299_v51 }
 0x35e   :  { %2672 = vmatprep.subr.bf16.mxu0 %v3263_v23  ;;  %2701 = vmatprep.subr.bf16.mxu1 %v3157_v48 }
 0x361   :  { %2674 = vmatpush1.bf16.msra.mxu0 %v3277_v31  ;;  %2703 = vmatpush3.bf16.msra.mxu1 %v3315_v61 }
 0x362   :  { %2676 = vmatprep.subr.bf16.mxu0 %v3280_v33  ;;  %2704 = vmatprep.subr.bf16.mxu1 %v3157_v48 }
 0x365   :  { %2678 = vmatpush1.bf16.msra.mxu0 %v3290_v42  ;;  %2706 = vmatpush3.bf16.msra.mxu1 %v3331_v8 }
 0x366   :  { %2680 = vmatprep.subr.bf16.mxu0 %v3293_v45  ;;  %2707 = vmatprep.subr.bf16.mxu1 %v3157_v48 }
 0x369   :  { %2682 = vmatpush1.bf16.msra.mxu0 %v3306_v53  ;;  %2709 = vmatpush3.bf16.msra.mxu1 %v3347_v19 }
 0x36a   :  { %2684 = vmatprep.subr.bf16.mxu0 %v3309_v56  ;;  %2710 = vmatprep.subr.bf16.mxu1 %v3157_v48 }
 0x36d   :  { %2686 = vmatpush1.bf16.msra.mxu0 %v3322_v63  ;;  %2712 = vmatpush3.bf16.msra.mxu1 %v3361_v26 }
 0x36e   :  { %2688 = vmatprep.subr.bf16.mxu0 %v3325_v3  ;;  %2713 = vmatprep.subr.bf16.mxu1 %v3157_v48 }
 0x371   :  { %2690 = vmatpush1.bf16.msra.mxu0 %v3338_v10  ;;  %2715 = vmatpush3.bf16.msra.mxu1 %v3371_v29 }
 0x372   :  { %2692 = vmatprep.subr.bf16.mxu0 %v3341_v14  ;;  %2716 = vmatprep.subr.bf16.mxu1 %v3157_v48 }
 0x375   :  { %2694 = vmatpush1.bf16.msra.mxu0 %v3354_v21  ;;  %2718 = vmatpush3.bf16.msra.mxu1 %v3380_v34 }
 0x376   :  { %2720 = vmatprep.subr.bf16.mxu0 %v3247_v12  ;;  %2751 = vmatprep.subr.bf16.mxu1 %v3157_v48 }
 0x42b   :  { %v997_v52 = vpop.f32.mrb[6].mxu0  ;;  %v1068_v38 = vpop.f32.mrb[14].mxu1 }
 0x42c   :  { %v2924_v41 = vadd.f32 %v3432_v4, %v997_v52  ;;  %v999_v46 = vpop.f32.mrb[7].mxu0  ;;  %v2255_v49 = vpop.f32.mrb[15].mxu1  ;;  %v1069_v62 = vadd.f32 %v1068_v38, %v3444_v36 }
 0x42d   :  { %v2926_v55 = vadd.f32 %v3436_v9, %v999_v46 }
 0x42e   :  { %v1925_v50 = vmul.f32 -1.442695, %v2924_v41 }
 0x42f   :  { %v1926_v57 = vmul.f32 -1.442695, %v2926_v55 }
 0x430   :  { %3000 = vpow2.f32 %v1925_v50 }
 0x431   :  { %3002 = vpow2.f32 %v1926_v57 }
 0x43a   :  { %v3001_v43 = vpop.eup %3000 }
 0x43b   :  { %v1076_v58 = vadd.f32 1.0, %v3001_v43  ;;  %v3003_v59 = vpop.eup %3002 }
 0x43c   :  { %v1083_v60 = vadd.f32 1.0, %v3003_v59 }
 0x43d   :  { %3004 = vrcp.f32 %v1076_v58 }
 0x43e   :  { %3006 = vrcp.f32 %v1083_v60 }
 0x447   :  { %v3005_v2 = vpop.eup %3004 }
 0x448   :  { %v1086_v6 = vmul.f32 %v3005_v2, %v1069_v62  ;;  %v3007_v39 = vpop.eup %3006 }
 0x449   :  { %v1089_v44 = vsub.f32 1.0, %v3007_v39  ;;  %v1091_v13 = vmul.f32 %v3007_v39, %v924_v35 }
 0x44a   :  { %v1087_v37 = vadd.f32 %v1086_v6, %v3423_v47 }
 0x44c   :  { %3008 = vtanh.f32 %v1087_v37 }
 0x456   :  { %v3009_v54 = vpop.eup %3008 }
 0x457   :  { %v1090_v7 = vmul.f32 %v3009_v54, %v1089_v44 }
 0x459   :  { %v1092_v17 = vadd.f32 %v1091_v13, %v1090_v7 }
 0x45b   :  { %1164 = vmatmul.mubr.f32.vlgmr.msra.gmra.mrb[8].mxu0 %v1092_v17  ;;  %2289 = vmatmul.mubr.f32.vlgmr.msra.gmra.mrb[16].mxu1 %v1092_v17 }
 0x45c   :  { %2722 = vmatpush1.bf16.msra.mxu0 %v3249_v15  ;;  %2753 = vmatpush3.bf16.msra.mxu1 %v3283_v40 }
 0x45d   :  { %2724 = vmatprep.subr.bf16.mxu0 %v3252_v16  ;;  %2754 = vmatprep.subr.bf16.mxu1 %v3157_v48 }
 0x45e   :  { %1331 = vmatprep.mubr.f32.mxu0 %v3156_v0  ;;  %2323 = vmatprep.mubr.msk.f32.mxu1 %vm3158_vm1, %v3156_v0 }
 0x460   :  { %2726 = vmatpush1.bf16.msra.mxu0 %v3260_v22  ;;  %2756 = vmatpush3.bf16.msra.mxu1 %v3299_v51 }
 0x461   :  { %2728 = vmatprep.subr.bf16.mxu0 %v3263_v23  ;;  %2757 = vmatprep.subr.bf16.mxu1 %v3157_v48 }
 0x464   :  { %2730 = vmatpush1.bf16.msra.mxu0 %v3277_v31  ;;  %2759 = vmatpush3.bf16.msra.mxu1 %v3315_v61 }
 0x465   :  { %2732 = vmatprep.subr.bf16.mxu0 %v3280_v33  ;;  %2760 = vmatprep.subr.bf16.mxu1 %v3157_v48 }
 0x468   :  { %2734 = vmatpush1.bf16.msra.mxu0 %v3290_v42  ;;  %2762 = vmatpush3.bf16.msra.mxu1 %v3331_v8 }
 0x469   :  { %2736 = vmatprep.subr.bf16.mxu0 %v3293_v45  ;;  %2763 = vmatprep.subr.bf16.mxu1 %v3157_v48 }
 0x46c   :  { %2738 = vmatpush1.bf16.msra.mxu0 %v3306_v53  ;;  %2765 = vmatpush3.bf16.msra.mxu1 %v3347_v19 }
 0x46d   :  { %2740 = vmatprep.subr.bf16.mxu0 %v3309_v56  ;;  %2766 = vmatprep.subr.bf16.mxu1 %v3157_v48 }
 0x470   :  { %2742 = vmatpush1.bf16.msra.mxu0 %v3322_v63  ;;  %2768 = vmatpush3.bf16.msra.mxu1 %v3361_v26 }
 0x471   :  { %2744 = vmatprep.subr.bf16.mxu0 %v3325_v3  ;;  %2769 = vmatprep.subr.bf16.mxu1 %v3157_v48 }
 0x474   :  { %2746 = vmatpush1.bf16.msra.mxu0 %v3338_v10  ;;  %2771 = vmatpush3.bf16.msra.mxu1 %v3371_v29 }
 0x475   :  { %2748 = vmatprep.subr.bf16.mxu0 %v3341_v14  ;;  %2772 = vmatprep.subr.bf16.mxu1 %v3157_v48 }
 0x478   :  { %2750 = vmatpush1.bf16.msra.mxu0 %v3354_v21  ;;  %2774 = vmatpush3.bf16.msra.mxu1 %v3380_v34 }
 0x479   :  { %2776 = vmatprep.subr.bf16.mxu0 %v3247_v12  ;;  %2807 = vmatprep.subr.bf16.mxu1 %v3157_v48 }
 0x52e   :  { %v1165_v47 = vpop.f32.mrb[8].mxu0  ;;  %v1236_v18 = vpop.f32.mrb[16].mxu1 }
 0x52f   :  { %v2928_v24 = vadd.f32 %v3432_v4, %v1165_v47  ;;  %v1167_v25 = vpop.f32.mrb[9].mxu0  ;;  %v2290_v27 = vpop.f32.mrb[17].mxu1  ;;  %v1237_v46 = vadd.f32 %v1236_v18, %v3444_v36 }
 0x530   :  { %v2930_v30 = vadd.f32 %v3436_v9, %v1167_v25 }
 0x531   :  { %v1927_v28 = vmul.f32 -1.442695, %v2928_v24 }
 0x532   :  { %v1928_v32 = vmul.f32 -1.442695, %v2930_v30 }
 0x533   :  { %3010 = vpow2.f32 %v1927_v28 }
 0x534   :  { %3012 = vpow2.f32 %v1928_v32 }
 0x53d   :  { %v3011_v35 = vpop.eup %3010 }
 0x53e   :  { %v1244_v52 = vadd.f32 1.0, %v3011_v35  ;;  %v3013_v38 = vpop.eup %3012 }
 0x53f   :  { %v1251_v41 = vadd.f32 1.0, %v3013_v38 }
 0x540   :  { %3014 = vrcp.f32 %v1244_v52 }
 0x541   :  { %3016 = vrcp.f32 %v1251_v41 }
 0x54a   :  { %v3015_v49 = vpop.eup %3014 }
 0x54b   :  { %v1254_v50 = vmul.f32 %v3015_v49, %v1237_v46  ;;  %v3017_v57 = vpop.eup %3016  ;;  %v1769_v46 = vld [vmem:[#allocation6 + $0x18] sm:$0xff] }
 0x54c   :  { %v1257_v43 = vsub.f32 1.0, %v3017_v57  ;;  %v1259_v60 = vmul.f32 %v3017_v57, %v1092_v17 }
 0x54d   :  { %v1255_v55 = vadd.f32 %v1254_v50, %v3434_v5  ;;  %v1770_v50 = vld [vmem:[#allocation6 + $0x20] sm:$0xff] }
 0x54f   :  { %3018 = vtanh.f32 %v1255_v55  ;;  %v1771_v55 = vld [vmem:[#allocation6 + $0x28] sm:$0xff] }
 0x550   :  { %v2894_v57 = vpack.c.bf16 %v1771_v55, %v1770_v50 }
 0x559   :  { %v3019_v58 = vpop.eup %3018 }
 0x55a   :  { %v1258_v59 = vmul.f32 %v3019_v58, %v1257_v43  ;;  %v1772_v43 = vld [vmem:[#allocation6 + $0x30] sm:$0xff] }
 0x55c   :  { %v1260_v62 = vadd.f32 %v1259_v60, %v1258_v59  ;;  %v1774_v59 = vld [vmem:[#allocation6 + $0x40] sm:$0xff]  ;;  %v1775_v60 = vld [vmem:[#allocation6 + $0x48] sm:$0xff] }
 0x55e   :  { %1332 = vmatmul.mubr.f32.vlgmr.msra.gmra.mrb[10].mxu0 %v1260_v62  ;;  %2324 = vmatmul.mubr.f32.vlgmr.msra.gmra.mrb[18].mxu1 %v1260_v62 }
 0x55f   :  { %2778 = vmatpush1.bf16.msra.mxu0 %v3249_v15  ;;  %2809 = vmatpush3.bf16.msra.mxu1 %v3283_v40 }
 0x560   :  { %2780 = vmatprep.subr.bf16.mxu0 %v3252_v16  ;;  %2810 = vmatprep.subr.bf16.mxu1 %v3157_v48 }
 0x561   :  { %1499 = vmatprep.mubr.f32.mxu0 %v3156_v0  ;;  %2358 = vmatprep.mubr.msk.f32.mxu1 %vm3158_vm1, %v3156_v0 }
 0x563   :  { %2782 = vmatpush1.bf16.msra.mxu0 %v3260_v22  ;;  %2812 = vmatpush3.bf16.msra.mxu1 %v3299_v51 }
 0x564   :  { %2784 = vmatprep.subr.bf16.mxu0 %v3263_v23  ;;  %2813 = vmatprep.subr.bf16.mxu1 %v3157_v48 }
 0x567   :  { %2786 = vmatpush1.bf16.msra.mxu0 %v3277_v31  ;;  %2815 = vmatpush3.bf16.msra.mxu1 %v3315_v61 }
 0x568   :  { %2788 = vmatprep.subr.bf16.mxu0 %v3280_v33  ;;  %2816 = vmatprep.subr.bf16.mxu1 %v3157_v48 }
 0x56b   :  { %2790 = vmatpush1.bf16.msra.mxu0 %v3290_v42  ;;  %2818 = vmatpush3.bf16.msra.mxu1 %v3331_v8 }
 0x56c   :  { %2792 = vmatprep.subr.bf16.mxu0 %v3293_v45  ;;  %2819 = vmatprep.subr.bf16.mxu1 %v3157_v48 }
 0x56f   :  { %2794 = vmatpush1.bf16.msra.mxu0 %v3306_v53  ;;  %2821 = vmatpush3.bf16.msra.mxu1 %v3347_v19 }
 0x570   :  { %2796 = vmatprep.subr.bf16.mxu0 %v3309_v56  ;;  %2822 = vmatprep.subr.bf16.mxu1 %v3157_v48 }
 0x573   :  { %2798 = vmatpush1.bf16.msra.mxu0 %v3322_v63  ;;  %2824 = vmatpush3.bf16.msra.mxu1 %v3361_v26 }
 0x574   :  { %2800 = vmatprep.subr.bf16.mxu0 %v3325_v3  ;;  %2825 = vmatprep.subr.bf16.mxu1 %v3157_v48 }
 0x577   :  { %2802 = vmatpush1.bf16.msra.mxu0 %v3338_v10  ;;  %2827 = vmatpush3.bf16.msra.mxu1 %v3371_v29 }
 0x578   :  { %2804 = vmatprep.subr.bf16.mxu0 %v3341_v14  ;;  %2828 = vmatprep.subr.bf16.mxu1 %v3157_v48 }
 0x57b   :  { %2806 = vmatpush1.bf16.msra.mxu0 %v3354_v21  ;;  %2830 = vmatpush3.bf16.msra.mxu1 %v3380_v34 }
 0x57c   :  { %2832 = vmatprep.subr.bf16.mxu0 %v3247_v12  ;;  %2863 = vmatprep.subr.bf16.mxu1 %v3157_v48 }
 0x631   :  { %v1333_v5 = vpop.f32.mrb[10].mxu0  ;;  %v1404_v2 = vpop.f32.mrb[18].mxu1 }
 0x632   :  { %v2932_v6 = vadd.f32 %v3432_v4, %v1333_v5  ;;  %v1335_v37 = vpop.f32.mrb[11].mxu0  ;;  %v2325_v39 = vpop.f32.mrb[19].mxu1  ;;  %v1405_v12 = vadd.f32 %v1404_v2, %v3444_v36  ;;  %v1776_v5 = vld [vmem:[#allocation6 + $0x50] sm:$0xff]  ;;  %v1777_v2 = vld [vmem:[#allocation6 + $0x58] sm:$0xff] }
 0x633   :  { %v2934_v54 = vadd.f32 %v3436_v9, %v1335_v37  ;;  %v1778_v37 = vld [vmem:[#allocation6 + $0x60] sm:$0xff]  ;;  %v1779_v39 = vld [vmem:[#allocation6 + $0x68] sm:$0xff] }
 0x634   :  { %v1929_v44 = vmul.f32 -1.442695, %v2932_v6  ;;  %v2903_v6 = vpack.c.bf16 %v1777_v2, %v1776_v5 }
 0x635   :  { %v1930_v7 = vmul.f32 -1.442695, %v2934_v54  ;;  %v1780_v54 = vld [vmem:[#allocation6 + $0x70] sm:$0xff] }
 0x636   :  { %3020 = vpow2.f32 %v1929_v44  ;;  %v2906_v44 = vpack.c.bf16 %v1779_v39, %v1778_v37 }
 0x637   :  { %3022 = vpow2.f32 %v1930_v7  ;;  %v1781_v7 = vld [vmem:[#allocation6 + $0x78] sm:$0xff] }
 0x640   :  { %v3021_v13 = vpop.eup %3020 }
 0x641   :  { %v1412_v17 = vadd.f32 1.0, %v3021_v13  ;;  %v3023_v47 = vpop.eup %3022  ;;  %v2909_v13 = vpack.c.bf16 %v1781_v7, %v1780_v54 }
 0x642   :  { %v1419_v18 = vadd.f32 1.0, %v3023_v47 }
 0x643   :  { %3024 = vrcp.f32 %v1412_v17 }
 0x644   :  { %3026 = vrcp.f32 %v1419_v18 }
 0x64d   :  { %v3025_v24 = vpop.eup %3024 }
 0x64e   :  { %v1422_v25 = vmul.f32 %v3025_v24, %v1405_v12  ;;  %v3027_v28 = vpop.eup %3026 }
 0x64f   :  { %v1425_v30 = vsub.f32 1.0, %v3027_v28  ;;  %v1427_v52 = vmul.f32 %v3027_v28, %v1260_v62  ;;  %v2900_v62 = vpack.c.bf16 %v1775_v60, %v1774_v59 }
 0x650   :  { %v1423_v27 = vadd.f32 %v1422_v25, %v3430_v1  ;;  %v1767_v1 = vld [vmem:[#allocation6 + $0x8] sm:$0xff] }
 0x652   :  { %3028 = vtanh.f32 %v1423_v27 }
 0x65c   :  { %v3029_v32 = vpop.eup %3028 }
 0x65d   :  { %v1426_v35 = vmul.f32 %v3029_v32, %v1425_v30 }
 0x65f   :  { %v1428_v38 = vadd.f32 %v1427_v52, %v1426_v35 }
 0x661   :  { %1500 = vmatmul.mubr.f32.vlgmr.msra.gmra.mrb[12].mxu0 %v1428_v38  ;;  %2359 = vmatmul.mubr.f32.vlgmr.msra.gmra.mrb[20].mxu1 %v1428_v38 }
 0x662   :  { %2834 = vmatpush1.bf16.msra.mxu0 %v3249_v15  ;;  %2865 = vmatpush3.bf16.msra.mxu1 %v3283_v40 }
 0x663   :  { %2836 = vmatprep.subr.bf16.mxu0 %v3252_v16  ;;  %2866 = vmatprep.subr.bf16.mxu1 %v3157_v48 }
 0x664   :  { %1667 = vmatprep.mubr.f32.mxu0 %v3156_v0  ;;  %2393 = vmatprep.mubr.msk.f32.mxu1 %vm3158_vm1, %v3156_v0 }
 0x666   :  { %2838 = vmatpush1.bf16.msra.mxu0 %v3260_v22  ;;  %2868 = vmatpush3.bf16.msra.mxu1 %v3299_v51 }
 0x667   :  { %2840 = vmatprep.subr.bf16.mxu0 %v3263_v23  ;;  %2869 = vmatprep.subr.bf16.mxu1 %v3157_v48 }
 0x66a   :  { %2842 = vmatpush1.bf16.msra.mxu0 %v3277_v31  ;;  %2871 = vmatpush3.bf16.msra.mxu1 %v3315_v61 }
 0x66b   :  { %2844 = vmatprep.subr.bf16.mxu0 %v3280_v33  ;;  %2872 = vmatprep.subr.bf16.mxu1 %v3157_v48 }
 0x66e   :  { %2846 = vmatpush1.bf16.msra.mxu0 %v3290_v42  ;;  %2874 = vmatpush3.bf16.msra.mxu1 %v3331_v8 }
 0x66f   :  { %2848 = vmatprep.subr.bf16.mxu0 %v3293_v45  ;;  %2875 = vmatprep.subr.bf16.mxu1 %v3157_v48 }
 0x672   :  { %2850 = vmatpush1.bf16.msra.mxu0 %v3306_v53  ;;  %2877 = vmatpush3.bf16.msra.mxu1 %v3347_v19 }
 0x673   :  { %2852 = vmatprep.subr.bf16.mxu0 %v3309_v56  ;;  %2878 = vmatprep.subr.bf16.mxu1 %v3157_v48 }
 0x676   :  { %2854 = vmatpush1.bf16.msra.mxu0 %v3322_v63  ;;  %2880 = vmatpush3.bf16.msra.mxu1 %v3361_v26 }
 0x677   :  { %2856 = vmatprep.subr.bf16.mxu0 %v3325_v3  ;;  %2881 = vmatprep.subr.bf16.mxu1 %v3157_v48 }
 0x67a   :  { %2858 = vmatpush1.bf16.msra.mxu0 %v3338_v10  ;;  %2883 = vmatpush3.bf16.msra.mxu1 %v3371_v29 }
 0x67b   :  { %2860 = vmatprep.subr.bf16.mxu0 %v3341_v14  ;;  %2884 = vmatprep.subr.bf16.mxu1 %v3157_v48 }
 0x67e   :  { %2862 = vmatpush1.bf16.msra.mxu0 %v3354_v21  ;;  %2886 = vmatpush3.bf16.msra.mxu1 %v3380_v34  ;;  %v1766_v34 = vld [vmem:[#allocation6] sm:$0xff] }
 0x67f   :  { %2887 = vmatprep.subr.bf16.mxu0 %v3157_v48  ;;  %v2888_v41 = vpack.c.bf16 %v1767_v1, %v1766_v34 }
 0x734   :  { %v1501_v15 = vpop.f32.mrb[12].mxu0  ;;  %v1572_v16 = vpop.f32.mrb[20].mxu1 }
 0x735   :  { %v2936_v22 = vadd.f32 %v3432_v4, %v1501_v15  ;;  %v1503_v23 = vpop.f32.mrb[13].mxu0  ;;  %v2360_v31 = vpop.f32.mrb[21].mxu1  ;;  %v1573_v61 = vadd.f32 %v1572_v16, %v3444_v36 }
 0x736   :  { %v2938_v40 = vadd.f32 %v3436_v9, %v1503_v23 }
 0x737   :  { %v1931_v33 = vmul.f32 -1.442695, %v2936_v22 }
 0x738   :  { %v1932_v42 = vmul.f32 -1.442695, %v2938_v40 }
 0x739   :  { %3030 = vpow2.f32 %v1931_v33 }
 0x73a   :  { %3032 = vpow2.f32 %v1932_v42 }
 0x743   :  { %v3031_v45 = vpop.eup %3030 }
 0x744   :  { %v1580_v51 = vadd.f32 1.0, %v3031_v45  ;;  %v3033_v53 = vpop.eup %3032 }
 0x745   :  { %v1587_v56 = vadd.f32 1.0, %v3033_v53 }
 0x746   :  { %3034 = vrcp.f32 %v1580_v51 }
 0x747   :  { %3036 = vrcp.f32 %v1587_v56 }
 0x750   :  { %v3035_v63 = vpop.eup %3034 }
 0x751   :  { %v1590_v3 = vmul.f32 %v3035_v63, %v1573_v61  ;;  %v3037_v10 = vpop.eup %3036 }
 0x752   :  { %v1593_v14 = vsub.f32 1.0, %v3037_v10  ;;  %v1595_v26 = vmul.f32 %v3037_v10, %v1428_v38 }
 0x753   :  { %v1591_v8 = vadd.f32 %v1590_v3, %v3441_v20  ;;  %v1768_v20 = vld [vmem:[#allocation6 + $0x10] sm:$0xff] }
 0x754   :  { %v2891_v49 = vpack.c.bf16 %v1769_v46, %v1768_v20 }
 0x755   :  { %3038 = vtanh.f32 %v1591_v8 }
 0x75f   :  { %v3039_v19 = vpop.eup %3038 }
 0x760   :  { %v1594_v21 = vmul.f32 %v3039_v19, %v1593_v14 }
 0x762   :  { %v3680_v29 = vadd.f32 %v1595_v26, %v1594_v21 }
 0x764   :  { %1668 = vmatmul.mubr.f32.vlgmr.msra.gmra.mrb[14].mxu0 %v3680_v29  ;;  %2394 = vmatmul.mubr.f32.vlgmr.msra.gmra.mrb[22].mxu1 %v3680_v29 }
 0x765   :  { %2428 = vmatprep.mubr.msk.f32.mxu0 %vm3158_vm1, %v3156_v0  ;;  %2889 = vmatpush3.bf16.msra.mxu0 %v2888_v41  ;;  %v1773_v0 = vld [vmem:[#allocation6 + $0x38] sm:$0xff] }
 0x766   :  { %2890 = vmatprep.subr.bf16.mxu0 %v3157_v48  ;;  %v2897_v58 = vpack.c.bf16 %v1773_v0, %v1772_v43 }
 0x769   :  { %2892 = vmatpush3.bf16.msra.mxu0 %v2891_v49 }
 0x76a   :  { %2893 = vmatprep.subr.bf16.mxu0 %v3157_v48 }
 0x76d   :  { %2895 = vmatpush3.bf16.msra.mxu0 %v2894_v57 }
 0x76e   :  { %2896 = vmatprep.subr.bf16.mxu0 %v3157_v48 }
 0x771   :  { %2898 = vmatpush3.bf16.msra.mxu0 %v2897_v58 }
 0x772   :  { %2899 = vmatprep.subr.bf16.mxu0 %v3157_v48 }
 0x775   :  { %2901 = vmatpush3.bf16.msra.mxu0 %v2900_v62 }
 0x776   :  { %2902 = vmatprep.subr.bf16.mxu0 %v3157_v48 }
 0x779   :  { %2904 = vmatpush3.bf16.msra.mxu0 %v2903_v6 }
 0x77a   :  { %2905 = vmatprep.subr.bf16.mxu0 %v3157_v48 }
 0x77d   :  { %2907 = vmatpush3.bf16.msra.mxu0 %v2906_v44 }
 0x77e   :  { %2908 = vmatprep.subr.bf16.mxu0 %v3157_v48 }
 0x781   :  { %2910 = vmatpush3.bf16.msra.mxu0 %v2909_v13 }
 0x837   :  { %v1669_v17 = vpop.f32.mrb[14].mxu0  ;;  %v1740_v47 = vpop.f32.mrb[22].mxu1 }
 0x838   :  { %v2940_v18 = vadd.f32 %v3432_v4, %v1669_v17  ;;  %v1671_v12 = vpop.f32.mrb[15].mxu0  ;;  %v2395_v24 = vpop.f32.mrb[23].mxu1  ;;  %v1741_v48 = vadd.f32 %v1740_v47, %v3444_v36 }
 0x839   :  { %v2942_v27 = vadd.f32 %v3436_v9, %v1671_v12 }
 0x83a   :  { %v1933_v25 = vmul.f32 -1.442695, %v2940_v18 }
 0x83b   :  { %v1934_v28 = vmul.f32 -1.442695, %v2942_v27 }
 0x83c   :  { %3040 = vpow2.f32 %v1933_v25 }
 0x83d   :  { %3042 = vpow2.f32 %v1934_v28 }
 0x846   :  { %v3041_v30 = vpop.eup %3040 }
 0x847   :  { %v1748_v32 = vadd.f32 1.0, %v3041_v30  ;;  %v3043_v35 = vpop.eup %3042 }
 0x848   :  { %v1755_v52 = vadd.f32 1.0, %v3043_v35 }
 0x849   :  { %3044 = vrcp.f32 %v1748_v32 }
 0x84a   :  { %3046 = vrcp.f32 %v1755_v52 }
 0x853   :  { %v3045_v38 = vpop.eup %3044 }
 0x854   :  { %v1758_v15 = vmul.f32 %v3045_v38, %v1741_v48  ;;  %v3047_v16 = vpop.eup %3046 }
 0x855   :  { %v1761_v22 = vsub.f32 1.0, %v3047_v16  ;;  %v1763_v31 = vmul.f32 %v3047_v16, %v3680_v29 }
 0x856   :  { %v1759_v4 = vadd.f32 %v1758_v15, %v3438_v11 }
 0x858   :  { %3048 = vtanh.f32 %v1759_v4 }
 0x862   :  { %v3049_v23 = vpop.eup %3048 }
 0x863   :  { %v1762_v9 = vmul.f32 %v3049_v23, %v1761_v22 }
 0x865   :  { %v1764_v33 = vadd.f32 %v1763_v31, %v1762_v9 }
 0x867   :  { %2429 = vmatmul.mubr.f32.vlgmr.msra.gmra.mrb[16].mxu0 %v1764_v33  ;;  %1765 = vst [vmem:[#allocation8] sm:$0xff] %v1764_v33 }
 0x868   :  { %3109 = shalt.err (!%p3106_p6)
}
 0x869   :  { %s3110_s18 = scalar_lea.hbm %s3732_s7, 128 }
 0x86a   :  { %p3111_p7 = scmp.ne.s32.totalorder %s3732_s7, %s3110_s18  ;;  %p3114_p8 = scmp.lt.u32.totalorder %s3110_s18, %s3732_s7 }
 0x86c   :  { %p3116_p9 = pnand %p3114_p8, %p3111_p7 }
 0x86e   :  { %3119 = shalt.err (!%p3116_p9)
}
 0x86f   :  { %1875 = dma.vmem_to_hbm [thread:$0]  %s1873_s4, 128, %s3732_s7, [#allocation5]   ;;  %v1935_v11 = vld [vmem:[%s3731_s6] ss:$0 sm:$0xff] }
 0x870   :  { %s3160_s1 = smov [#allocation9]  }
 0x871   :  { %s1882_s27 = sshll.u32 %s3160_s1, 4  ;;  %s1883_s27 = int_to_ptr.vmem [resolvable:$true] %s1882_s27 }
 0x872   :  { %s3120_s29 = scalar_lea.vmem %s1883_s27, 128  ;;  %p3125_p11 = scmp.lt.s32.totalorder %s1883_s27, %s1883_s27 }
 0x873   :  { %p3121_p10 = scmp.ne.s32.totalorder %s1883_s27, %s3120_s29  ;;  %p3126_p12 = scmp.lt.s32.totalorder %s3120_s29, %s3120_s29 }
 0x875   :  { %p3127_p13 = por %p3126_p12, %p3125_p11 }
 0x877   :  { %p3128_p0 = pnand %p3127_p13, %p3121_p10 }
 0x93a   :  { %v1855_v36 = vpop.f32.mrb[16].mxu0 }
 0x93b   :  { %v1856_v40 = vadd.f32 %v1935_v11, %v1855_v36  ;;  %v2430_v42 = vpop.f32.mrb[17].mxu0 }
 0x93d   :  { %v1936_v45 = vmul.f32 -1.442695, %v1856_v40 }
 0x93f   :  { %3050 = vpow2.f32 %v1936_v45 }
 0x949   :  { %v3051_v51 = vpop.eup %3050 }
 0x94a   :  { %v1862_v53 = vadd.f32 1.0, %v3051_v51 }
 0x94c   :  { %3052 = vrcp.f32 %v1862_v53 }
 0x956   :  { %v3053_v56 = vpop.eup %3052 }
 0x957   :  { %1865 = vst [vmem:[#allocation9] sm:$0xff] %v3053_v56 }
 0x958   :  { %3131 = shalt.err (!%p3128_p0)
}
 0x959   :  { %s3132_s2 = scalar_lea.hbm %s3733_s8, 128 }
 0x95a   :  { %p3133_p1 = scmp.ne.s32.totalorder %s3733_s8, %s3132_s2  ;;  %p3136_p2 = scmp.lt.u32.totalorder %s3132_s2, %s3733_s8 }
 0x95c   :  { %p3138_p3 = pnand %p3136_p2, %p3133_p1 }
 0x95e   :  { %3141 = shalt.err (!%p3138_p3)
}
 0x95f   :  { %1885 = dma.vmem_to_hbm [thread:$0]  %s1883_s27, 128, %s3733_s8, [#allocation10]  }
 0x960   :  { %3146 = dma.done.wait [#allocation5], 128  }
 0x961   :  { %3147 = vsyncadd [#allocation5], 4294967168 }
 0x962   :  { %3148 = dma.done.wait [#allocation10], 128  }
 0x963   :  { %3149 = vsyncadd [#allocation10], 4294967168 }
 0x964   :  { %1892 = vsyncpa [#allocation4], 1 }
 0x965   :  { %1893 = vsyncpa [#allocation7], 1 }
 0x966   :  { %1894 = vsyncpa [#allocation5], 1 }
 0x967   :  { %1895 = vsyncpa [#allocation10], 1 }

</bundles_post_ra>
